<compile_context>
chip_gen: v7x
topology: tpu7x:2x2x1
jax: 0.10.0
libtpu: 0.0.40
codegen_flags: <defaults>
</compile_context>

<pallas_src>
import jax
import jax.numpy as jnp
from jax.experimental import pallas as pl
from jax.experimental.pallas import tpu as pltpu

NEG_BIG = -1e30  # bias for the lane-padding columns of the msg head


def _round_up(x, m):
    return ((x + m - 1) // m) * m


def rnn_sender_kernel(ctx_ref, gum_ref, wctx_ref, wmh_ref, bg_ref,
                      wout_ref, bout_ref,
                      probs_ref, msgs_ref,
                      comb_ref):
    """Full max_len rollout for one batch block (grid axis 0 = batch, 'parallel')."""
    max_len = gum_ref.shape[0]
    bb = comb_ref.shape[0]
    h_pad = wout_ref.shape[0]
    m_pad = wout_ref.shape[1]

    # persistent [cur_msg | hidden] state, both segments 128-lane aligned
    comb_ref[...] = jnp.zeros_like(comb_ref)

    # context contribution + gate bias, computed ONCE (ctx is constant over time)
    base = jnp.dot(ctx_ref[...], wctx_ref[...],
                   preferred_element_type=jnp.float32) + bg_ref[...]

    colf = jax.lax.broadcasted_iota(jnp.int32, (bb, m_pad), 1).astype(jnp.float32)

    def step(t, carry):
        # ---- LSTMCell with zero previous state: gates = base + [msg|h] @ W_mh ----
        gates = base + jnp.dot(comb_ref[...].astype(jnp.bfloat16), wmh_ref[...],
                               preferred_element_type=jnp.float32)
        # each gate sits in its own aligned 128-lane slot (padding lanes are 0)
        i_g = jax.nn.sigmoid(gates[:, 0 * h_pad:1 * h_pad])
        # forget gate multiplies c_prev == 0 -> contributes nothing
        g_g = jnp.tanh(gates[:, 2 * h_pad:3 * h_pad])
        o_g = jax.nn.sigmoid(gates[:, 3 * h_pad:4 * h_pad])
        c_new = i_g * g_g                  # c' = f*0 + i*g   (padded lanes exactly 0)
        h_new = o_g * jnp.tanh(c_new)      # h' = o * tanh(c') (padded lanes exactly 0)

        # ---- msg head on the cell state (the module's `output`), lane-padded -------
        logits = jnp.dot(c_new.astype(jnp.bfloat16), wout_ref[...],
                         preferred_element_type=jnp.float32) + bout_ref[...]
        logits = logits - jnp.max(logits, axis=-1, keepdims=True)
        e = jnp.exp(logits)                # padded lanes: exp(~ -1e30) == 0
        probs = e / jnp.sum(e, axis=-1, keepdims=True)

        # ---- categorical sample: Gumbel-max over host-provided noise ---------------
        pert = logits + gum_ref[t]
        is_max = pert >= jnp.max(pert, axis=-1, keepdims=True)
        first = jnp.min(jnp.where(is_max, colf, float(m_pad)),
                        axis=-1, keepdims=True)
        onehot = (colf == first).astype(jnp.float32)

        # ---- lane-dense per-step outputs (last dim = 128) ---------------------------
        probs_ref[t] = probs
        msgs_ref[t] = onehot.astype(msgs_ref.dtype)

        # ---- aligned, full-width feedback stores into the persistent state ---------
        comb_ref[:, :m_pad] = onehot
        comb_ref[:, m_pad:] = h_new
        return carry

    jax.lax.fori_loop(0, max_len, step, 0, unroll=True)


def init_raw_params(key, context_size, num_msgs, hidden_size):
    """Deterministic torch-layout nn.LSTMCell / nn.Linear parameters."""
    H = hidden_size
    in_sz = context_size + num_msgs + hidden_size
    k = 1.0 / jnp.sqrt(jnp.float32(H))
    ks = jax.random.split(key, 5)
    w_ih = jax.random.uniform(ks[0], (4 * H, in_sz), jnp.float32, -k, k)
    b_ih = jax.random.uniform(ks[1], (4 * H,), jnp.float32, -k, k)
    b_hh = jax.random.uniform(ks[2], (4 * H,), jnp.float32, -k, k)
    # (W_hh exists in torch too but never contributes: the cell always gets h_prev = 0.)
    w_msg = jax.random.uniform(ks[3], (num_msgs, H), jnp.float32, -k, k)
    b_msg = jax.random.uniform(ks[4], (num_msgs,), jnp.float32, -k, k)
    return w_ih, b_ih, b_hh, w_msg, b_msg


def pack_params(raw, context_size):
    """Split / transpose / lane-pad raw torch weights into the kernel layout.

    Layout: each gate gets its own 128-lane slot of the gate output; the input rows
    are split into a context block (f32, used once) and a [cur_msg | hidden] block
    (bf16, used every step) whose two segments are 128-lane aligned.
    """
    w_ih, b_ih, b_hh, w_msg, b_msg = raw
    M, H = w_msg.shape
    C = context_size
    C_PAD = _round_up(max(C, 1), 128)
    M_PAD = _round_up(max(M, 1), 128)
    H_PAD = _round_up(H, 128)
    G = 4 * H_PAD

    w_ih_t = jnp.transpose(w_ih)                  # (C+M+H, 4H), gate order i,f,g,o
    wctx = jnp.zeros((C_PAD, G), jnp.float32)
    wmh = jnp.zeros((M_PAD + H_PAD, G), jnp.float32)
    bg = jnp.zeros((1, G), jnp.float32)
    bsum = b_ih + b_hh
    for k in range(4):
        col = slice(k * H_PAD, k * H_PAD + H)
        src = slice(k * H, (k + 1) * H)
        wctx = wctx.at[:C, col].set(w_ih_t[:C, src])
        wmh = wmh.at[:M, col].set(w_ih_t[C:C + M, src])
        wmh = wmh.at[M_PAD:M_PAD + H, col].set(w_ih_t[C + M:, src])
        bg = bg.at[0, col].set(bsum[src])
    wmh = wmh.astype(jnp.bfloat16)

    wout = (jnp.zeros((H_PAD, M_PAD), jnp.float32)
            .at[:H, :M].set(jnp.transpose(w_msg))).astype(jnp.bfloat16)
    bout = jnp.full((1, M_PAD), NEG_BIG, jnp.float32).at[0, :M].set(b_msg)
    return wctx, wmh, bg, wout, bout, (C_PAD, M_PAD, H_PAD)


def rnn_sender_forward(contexts, packed, key, *, max_len, num_msgs):
    """Fused forward: returns ([per-step probs], [per-step one-hot msgs])."""
    wctx, wmh, bg, wout, bout, (C_PAD, M_PAD, H_PAD) = packed
    B, C = contexts.shape

    # pad the batch to a full sublane group; block it for the 'parallel' grid axis
    Bp = _round_up(max(B, 8), 8)
    if Bp <= 128:
        b_block = Bp
    else:
        Bp = _round_up(B, 128)
        b_block = 128

    ctx_p = jnp.zeros((Bp, C_PAD), jnp.float32).at[:B, :C].set(contexts)
    gumbel = jax.random.gumbel(key, (max_len, Bp, M_PAD), jnp.float32)

    grid_spec = pltpu.PrefetchScalarGridSpec(
        num_scalar_prefetch=0,
        grid=(Bp // b_block,),
        in_specs=[
            pl.BlockSpec((b_block, C_PAD), lambda b: (b, 0)),
            pl.BlockSpec((max_len, b_block, M_PAD), lambda b: (0, b, 0)),
            # constant index_maps -> weights DMA'd once, VMEM-resident for the rollout
            pl.BlockSpec((C_PAD, 4 * H_PAD), lambda b: (0, 0)),
            pl.BlockSpec((M_PAD + H_PAD, 4 * H_PAD), lambda b: (0, 0)),
            pl.BlockSpec((1, 4 * H_PAD), lambda b: (0, 0)),
            pl.BlockSpec((H_PAD, M_PAD), lambda b: (0, 0)),
            pl.BlockSpec((1, M_PAD), lambda b: (0, 0)),
        ],
        out_specs=[
            pl.BlockSpec((max_len, b_block, M_PAD), lambda b: (0, b, 0)),
            pl.BlockSpec((max_len, b_block, M_PAD), lambda b: (0, b, 0)),
        ],
        scratch_shapes=[pltpu.VMEM((b_block, M_PAD + H_PAD), jnp.float32)],
    )

    probs_slab, msgs_slab = pl.pallas_call(
        rnn_sender_kernel,
        out_shape=(
            jax.ShapeDtypeStruct((max_len, Bp, M_PAD), jnp.float32),
            jax.ShapeDtypeStruct((max_len, Bp, M_PAD), jnp.bfloat16),
        ),
        grid_spec=grid_spec,
        compiler_params=pltpu.CompilerParams(
            dimension_semantics=("parallel",)),    # batch blocks -> v7x megacore
    )(ctx_p, gumbel, wctx, wmh, bg, wout, bout)

    msg_dists = [probs_slab[t, :B, :num_msgs] for t in range(max_len)]
    msgs = [msgs_slab[t, :B, :num_msgs].astype(jnp.float32) for t in range(max_len)]
    return msg_dists, msgs


def reference_probs(contexts, raw, msgs, max_len):
    """Pure-JAX replay of the torch module (with the kernel's bf16 weight rounding),
    consuming the kernel's own sampled messages."""
    w_ih, b_ih, b_hh, w_msg, b_msg = raw
    M, H = w_msg.shape
    B, C = contexts.shape

    def bf(x):  # mirror the kernel's bf16 storage / matmul-input rounding
        return x.astype(jnp.bfloat16).astype(jnp.float32)

    W_ctx = w_ih[:, :C]                 # kept in f32 in the kernel (one-time matmul)
    W_m = bf(w_ih[:, C:C + M])
    W_h = bf(w_ih[:, C + M:])
    w_msg_b = bf(w_msg)
    b = b_ih + b_hh

    hidden = jnp.zeros((B, H), jnp.float32)
    cur_msg = jnp.zeros((B, M), jnp.float32)
    out = []
    for t in range(max_len):
        gates = contexts @ W_ctx.T + bf(cur_msg) @ W_m.T + bf(hidden) @ W_h.T + b
        i = jax.nn.sigmoid(gates[:, 0 * H:1 * H])
        g = jnp.tanh(gates[:, 2 * H:3 * H])
        o = jax.nn.sigmoid(gates[:, 3 * H:4 * H])
        c = i * g
        h = o * jnp.tanh(c)
        out.append(jax.nn.softmax(bf(c) @ w_msg_b.T + b_msg, axis=-1))
        hidden = h
        cur_msg = msgs[t]
    return out


if __name__ == "__main__":
    BATCH = 8            # one full sublane group (perf feedback: avoid B=2)
    CONTEXT_SIZE = 16
    NUM_MSGS = 2
    HIDDEN = 64          # module default hidden_size
    MAX_LEN = 2          # module default max_len
    root = jax.random.PRNGKey(0)
    k_param, k_ctx, k_sample = jax.random.split(root, 3)

    raw = init_raw_params(k_param, CONTEXT_SIZE, NUM_MSGS, HIDDEN)
    packed = pack_params(raw, CONTEXT_SIZE)
    contexts = jax.random.normal(k_ctx, (BATCH, CONTEXT_SIZE), jnp.float32)

    msg_dists, msgs = rnn_sender_forward(
        contexts, packed, k_sample, max_len=MAX_LEN, num_msgs=NUM_MSGS)
    jax.block_until_ready((msg_dists, msgs))

    # shape / simplex sanity
    assert len(msg_dists) == MAX_LEN and len(msgs) == MAX_LEN
    for p, m in zip(msg_dists, msgs):
        assert p.shape == (BATCH, NUM_MSGS)
        assert m.shape == (BATCH, NUM_MSGS)
        assert bool(jnp.all(jnp.abs(jnp.sum(p, axis=-1) - 1.0) < 1e-5))
        assert bool(jnp.all(jnp.sum(m, axis=-1) == 1.0))
        assert bool(jnp.all((m == 0.0) | (m == 1.0)))

    # numerical check of the recurrence against a pure-JAX replay that reuses the
    # kernel's sampled messages (sampling itself is stochastic, not bit-matched)
    ref = reference_probs(contexts, raw, msgs, MAX_LEN)
    for p, r in zip(msg_dists, ref):
        assert bool(jnp.all(jnp.abs(p - r) < 5e-3))

    print("KERNEL_OK")
</pallas_src>

<mosaic_0001>
module attributes {stable_mosaic.version = 11 : i64} {
  func.func @rnn_sender_kernel(%arg0: i32, %arg1: memref<8x128xf32, #tpu.memory_space<vmem>>, %arg2: memref<2x8x128xf32, #tpu.memory_space<vmem>>, %arg3: memref<128x512xf32, #tpu.memory_space<vmem>>, %arg4: memref<256x512xbf16, #tpu.memory_space<vmem>>, %arg5: memref<1x512xf32, #tpu.memory_space<vmem>>, %arg6: memref<128x128xbf16, #tpu.memory_space<vmem>>, %arg7: memref<1x128xf32, #tpu.memory_space<vmem>>, %arg8: memref<2x8x128xf32, #tpu.memory_space<vmem>>, %arg9: memref<2x8x128xbf16, #tpu.memory_space<vmem>>, %arg10: memref<8x256xf32, #tpu.memory_space<vmem>>) attributes {dimension_semantics = [#tpu.dimension_semantics<parallel>], iteration_bounds = array<i64: 1>, scalar_prefetch = 0 : i64, scratch_operands = 1 : i64, tpu.core_type = #tpu.core_type<tc>, window_params = [{transform_indices = @transform_0, window_bounds = array<i64: 8, 128>}, {transform_indices = @transform_1, window_bounds = array<i64: 2, 8, 128>}, {pipeline_mode = #tpu.pipeline_mode<synchronous>, transform_indices = @transform_2, window_bounds = array<i64: 128, 512>}, {pipeline_mode = #tpu.pipeline_mode<synchronous>, transform_indices = @transform_3, window_bounds = array<i64: 256, 512>}, {pipeline_mode = #tpu.pipeline_mode<synchronous>, transform_indices = @transform_4, window_bounds = array<i64: 1, 512>}, {pipeline_mode = #tpu.pipeline_mode<synchronous>, transform_indices = @transform_5, window_bounds = array<i64: 128, 128>}, {pipeline_mode = #tpu.pipeline_mode<synchronous>, transform_indices = @transform_6, window_bounds = array<i64: 1, 128>}, {transform_indices = @transform_7, window_bounds = array<i64: 2, 8, 128>}, {transform_indices = @transform_8, window_bounds = array<i64: 2, 8, 128>}]} {
    %cst = arith.constant 0.000000e+00 : f32
    %0 = vector.broadcast %cst : f32 to vector<8x256xf32>
    %c0 = arith.constant 0 : index
    %c0_0 = arith.constant 0 : index
    %1 = vector.load %arg10[%c0, %c0_0] : memref<8x256xf32, #tpu.memory_space<vmem>>, vector<8x256xf32>
    tpu.vector_store %arg10[%c0, %c0_0], %0 {strides = array<i32>} : memref<8x256xf32, #tpu.memory_space<vmem>>, vector<8x256xf32>,
    %c0_1 = arith.constant 0 : index
    %c0_2 = arith.constant 0 : index
    %2 = vector.load %arg1[%c0_1, %c0_2] : memref<8x128xf32, #tpu.memory_space<vmem>>, vector<8x128xf32>
    %c0_3 = arith.constant 0 : index
    %c0_4 = arith.constant 0 : index
    %3 = vector.load %arg3[%c0_3, %c0_4] : memref<128x512xf32, #tpu.memory_space<vmem>>, vector<128x512xf32>
    %cst_5 = arith.constant dense<0.000000e+00> : vector<8x512xf32>
    %4 = tpu.matmul %2, %3, %cst_5 {dimension_numbers = #tpu.dot_dimension_numbers<[1], [0], [0], [1], [0, 0, 1, 1], [], []>} : vector<8x128xf32>, vector<128x512xf32>, vector<8x512xf32> -> vector<8x512xf32>
    %c0_6 = arith.constant 0 : index
    %c0_7 = arith.constant 0 : index
    %5 = vector.load %arg5[%c0_6, %c0_7] : memref<1x512xf32, #tpu.memory_space<vmem>>, vector<1x512xf32>
    %6 = vector.broadcast %5 : vector<1x512xf32> to vector<8x512xf32>
    %7 = arith.addf %4, %6 : vector<8x512xf32>
    %8 = tpu.iota {dimensions = array<i32: 1>} : vector<8x128xi32>
    %9 = arith.sitofp %8 : vector<8x128xi32> to vector<8x128xf32>
    %c0_i32 = arith.constant 0 : i32
    %c0_8 = arith.constant 0 : index
    %c0_9 = arith.constant 0 : index
    %10 = vector.load %arg10[%c0_8, %c0_9] : memref<8x256xf32, #tpu.memory_space<vmem>>, vector<8x256xf32>
    %11 = arith.truncf %10 : vector<8x256xf32> to vector<8x256xbf16>
    %c0_10 = arith.constant 0 : index
    %c0_11 = arith.constant 0 : index
    %12 = vector.load %arg4[%c0_10, %c0_11] : memref<256x512xbf16, #tpu.memory_space<vmem>>, vector<256x512xbf16>
    %cst_12 = arith.constant dense<0.000000e+00> : vector<8x512xf32>
    %13 = tpu.matmul %11, %12, %cst_12 {dimension_numbers = #tpu.dot_dimension_numbers<[1], [0], [0], [1], [0, 0, 1, 1], [], []>} : vector<8x256xbf16>, vector<256x512xbf16>, vector<8x512xf32> -> vector<8x512xf32>
    %14 = arith.addf %7, %13 : vector<8x512xf32>
    %15 = vector.extract_strided_slice %14 {offsets = [0, 0], sizes = [8, 128], strides = [1, 1]} : vector<8x512xf32> to vector<8x128xf32>
    %16 = arith.negf %15 : vector<8x128xf32>
    %17 = math.exp %16 : vector<8x128xf32>
    %cst_13 = arith.constant 1.000000e+00 : f32
    %18 = vector.broadcast %cst_13 : f32 to vector<8x128xf32>
    %19 = arith.addf %18, %17 : vector<8x128xf32>
    %20 = arith.divf %18, %19 : vector<8x128xf32>
    %21 = vector.extract_strided_slice %14 {offsets = [0, 256], sizes = [8, 128], strides = [1, 1]} : vector<8x512xf32> to vector<8x128xf32>
    %22 = math.tanh %21 : vector<8x128xf32>
    %23 = vector.extract_strided_slice %14 {offsets = [0, 384], sizes = [8, 128], strides = [1, 1]} : vector<8x512xf32> to vector<8x128xf32>
    %24 = arith.negf %23 : vector<8x128xf32>
    %25 = math.exp %24 : vector<8x128xf32>
    %cst_14 = arith.constant 1.000000e+00 : f32
    %26 = vector.broadcast %cst_14 : f32 to vector<8x128xf32>
    %27 = arith.addf %26, %25 : vector<8x128xf32>
    %28 = arith.divf %26, %27 : vector<8x128xf32>
    %29 = arith.mulf %20, %22 : vector<8x128xf32>
    %30 = math.tanh %29 : vector<8x128xf32>
    %31 = arith.mulf %28, %30 : vector<8x128xf32>
    %32 = arith.truncf %29 : vector<8x128xf32> to vector<8x128xbf16>
    %c0_15 = arith.constant 0 : index
    %c0_16 = arith.constant 0 : index
    %33 = vector.load %arg6[%c0_15, %c0_16] : memref<128x128xbf16, #tpu.memory_space<vmem>>, vector<128x128xbf16>
    %cst_17 = arith.constant dense<0.000000e+00> : vector<8x128xf32>
    %34 = tpu.matmul %32, %33, %cst_17 {dimension_numbers = #tpu.dot_dimension_numbers<[1], [0], [0], [1], [0, 0, 1, 1], [], []>} : vector<8x128xbf16>, vector<128x128xbf16>, vector<8x128xf32> -> vector<8x128xf32>
    %c0_18 = arith.constant 0 : index
    %c0_19 = arith.constant 0 : index
    %35 = vector.load %arg7[%c0_18, %c0_19] : memref<1x128xf32, #tpu.memory_space<vmem>>, vector<1x128xf32>
    %36 = vector.broadcast %35 : vector<1x128xf32> to vector<8x128xf32>
    %37 = arith.addf %34, %36 : vector<8x128xf32>
    %cst_20 = arith.constant dense<0xFF800000> : vector<8xf32>
    %38 = vector.multi_reduction <maximumf>, %37, %cst_20 [1] : vector<8x128xf32> to vector<8xf32>
    %39 = vector.shape_cast %38 : vector<8xf32> to vector<8x1xf32>
    %40 = vector.broadcast %39 : vector<8x1xf32> to vector<8x128xf32>
    %41 = arith.subf %37, %40 : vector<8x128xf32>
    %42 = math.exp %41 : vector<8x128xf32>
    %cst_21 = arith.constant dense<0.000000e+00> : vector<8xf32>
    %43 = vector.multi_reduction <add>, %42, %cst_21 [1] : vector<8x128xf32> to vector<8xf32>
    %44 = vector.shape_cast %43 : vector<8xf32> to vector<8x1xf32>
    %45 = vector.broadcast %44 : vector<8x1xf32> to vector<8x128xf32>
    %46 = arith.divf %42, %45 : vector<8x128xf32>
    %47 = arith.index_cast %c0_i32 : i32 to index
    %c0_22 = arith.constant 0 : index
    %c0_23 = arith.constant 0 : index
    %48 = vector.load %arg2[%47, %c0_22, %c0_23] : memref<2x8x128xf32, #tpu.memory_space<vmem>>, vector<1x8x128xf32>
    %49 = vector.shape_cast %48 : vector<1x8x128xf32> to vector<8x128xf32>
    %50 = arith.addf %41, %49 : vector<8x128xf32>
    %cst_24 = arith.constant dense<0xFF800000> : vector<8xf32>
    %51 = vector.multi_reduction <maximumf>, %50, %cst_24 [1] : vector<8x128xf32> to vector<8xf32>
    %52 = vector.shape_cast %51 : vector<8xf32> to vector<8x1xf32>
    %53 = vector.broadcast %52 : vector<8x1xf32> to vector<8x128xf32>
    %54 = arith.cmpf oge, %50, %53 : vector<8x128xf32>
    %cst_25 = arith.constant 1.280000e+02 : f32
    %55 = vector.broadcast %cst_25 : f32 to vector<8x128xf32>
    %56 = arith.select %54, %9, %55 : vector<8x128xi1>, vector<8x128xf32>
    %cst_26 = arith.constant dense<0x7F800000> : vector<8xf32>
    %57 = vector.multi_reduction <minimumf>, %56, %cst_26 [1] : vector<8x128xf32> to vector<8xf32>
    %58 = vector.shape_cast %57 : vector<8xf32> to vector<8x1xf32>
    %59 = vector.broadcast %58 : vector<8x1xf32> to vector<8x128xf32>
    %60 = arith.cmpf oeq, %9, %59 : vector<8x128xf32>
    %61 = arith.extui %60 : vector<8x128xi1> to vector<8x128xi32>
    %62 = arith.sitofp %61 : vector<8x128xi32> to vector<8x128xf32>
    %63 = arith.index_cast %c0_i32 : i32 to index
    %c0_27 = arith.constant 0 : index
    %c0_28 = arith.constant 0 : index
    %64 = vector.load %arg8[%63, %c0_27, %c0_28] : memref<2x8x128xf32, #tpu.memory_space<vmem>>, vector<1x8x128xf32>
    %65 = vector.shape_cast %64 : vector<1x8x128xf32> to vector<8x128xf32>
    %66 = vector.shape_cast %46 : vector<8x128xf32> to vector<1x8x128xf32>
    tpu.vector_store %arg8[%63, %c0_27, %c0_28], %66 {strides = array<i32>} : memref<2x8x128xf32, #tpu.memory_space<vmem>>, vector<1x8x128xf32>,
    %67 = arith.truncf %62 : vector<8x128xf32> to vector<8x128xbf16>
    %68 = arith.index_cast %c0_i32 : i32 to index
    %c0_29 = arith.constant 0 : index
    %c0_30 = arith.constant 0 : index
    %69 = vector.load %arg9[%68, %c0_29, %c0_30] : memref<2x8x128xbf16, #tpu.memory_space<vmem>>, vector<1x8x128xbf16>
    %70 = vector.shape_cast %69 : vector<1x8x128xbf16> to vector<8x128xbf16>
    %71 = vector.shape_cast %67 : vector<8x128xbf16> to vector<1x8x128xbf16>
    tpu.vector_store %arg9[%68, %c0_29, %c0_30], %71 {strides = array<i32>} : memref<2x8x128xbf16, #tpu.memory_space<vmem>>, vector<1x8x128xbf16>,
    %c0_31 = arith.constant 0 : index
    %c0_32 = arith.constant 0 : index
    %72 = vector.load %arg10[%c0_31, %c0_32] : memref<8x256xf32, #tpu.memory_space<vmem>>, vector<8x128xf32>
    tpu.vector_store %arg10[%c0_31, %c0_32], %62 {strides = array<i32>} : memref<8x256xf32, #tpu.memory_space<vmem>>, vector<8x128xf32>,
    %c0_33 = arith.constant 0 : index
    %c128 = arith.constant 128 : index
    %73 = vector.load %arg10[%c0_33, %c128] : memref<8x256xf32, #tpu.memory_space<vmem>>, vector<8x128xf32>
    tpu.vector_store %arg10[%c0_33, %c128], %31 {strides = array<i32>} : memref<8x256xf32, #tpu.memory_space<vmem>>, vector<8x128xf32>,
    %c1_i32 = arith.constant 1 : i32
    %c0_34 = arith.constant 0 : index
    %c0_35 = arith.constant 0 : index
    %74 = vector.load %arg10[%c0_34, %c0_35] : memref<8x256xf32, #tpu.memory_space<vmem>>, vector<8x256xf32>
    %75 = arith.truncf %74 : vector<8x256xf32> to vector<8x256xbf16>
    %c0_36 = arith.constant 0 : index
    %c0_37 = arith.constant 0 : index
    %76 = vector.load %arg4[%c0_36, %c0_37] : memref<256x512xbf16, #tpu.memory_space<vmem>>, vector<256x512xbf16>
    %cst_38 = arith.constant dense<0.000000e+00> : vector<8x512xf32>
    %77 = tpu.matmul %75, %76, %cst_38 {dimension_numbers = #tpu.dot_dimension_numbers<[1], [0], [0], [1], [0, 0, 1, 1], [], []>} : vector<8x256xbf16>, vector<256x512xbf16>, vector<8x512xf32> -> vector<8x512xf32>
    %78 = arith.addf %7, %77 : vector<8x512xf32>
    %79 = vector.extract_strided_slice %78 {offsets = [0, 0], sizes = [8, 128], strides = [1, 1]} : vector<8x512xf32> to vector<8x128xf32>
    %80 = arith.negf %79 : vector<8x128xf32>
    %81 = math.exp %80 : vector<8x128xf32>
    %cst_39 = arith.constant 1.000000e+00 : f32
    %82 = vector.broadcast %cst_39 : f32 to vector<8x128xf32>
    %83 = arith.addf %82, %81 : vector<8x128xf32>
    %84 = arith.divf %82, %83 : vector<8x128xf32>
    %85 = vector.extract_strided_slice %78 {offsets = [0, 256], sizes = [8, 128], strides = [1, 1]} : vector<8x512xf32> to vector<8x128xf32>
    %86 = math.tanh %85 : vector<8x128xf32>
    %87 = vector.extract_strided_slice %78 {offsets = [0, 384], sizes = [8, 128], strides = [1, 1]} : vector<8x512xf32> to vector<8x128xf32>
    %88 = arith.negf %87 : vector<8x128xf32>
    %89 = math.exp %88 : vector<8x128xf32>
    %cst_40 = arith.constant 1.000000e+00 : f32
    %90 = vector.broadcast %cst_40 : f32 to vector<8x128xf32>
    %91 = arith.addf %90, %89 : vector<8x128xf32>
    %92 = arith.divf %90, %91 : vector<8x128xf32>
    %93 = arith.mulf %84, %86 : vector<8x128xf32>
    %94 = math.tanh %93 : vector<8x128xf32>
    %95 = arith.mulf %92, %94 : vector<8x128xf32>
    %96 = arith.truncf %93 : vector<8x128xf32> to vector<8x128xbf16>
    %c0_41 = arith.constant 0 : index
    %c0_42 = arith.constant 0 : index
    %97 = vector.load %arg6[%c0_41, %c0_42] : memref<128x128xbf16, #tpu.memory_space<vmem>>, vector<128x128xbf16>
    %cst_43 = arith.constant dense<0.000000e+00> : vector<8x128xf32>
    %98 = tpu.matmul %96, %97, %cst_43 {dimension_numbers = #tpu.dot_dimension_numbers<[1], [0], [0], [1], [0, 0, 1, 1], [], []>} : vector<8x128xbf16>, vector<128x128xbf16>, vector<8x128xf32> -> vector<8x128xf32>
    %c0_44 = arith.constant 0 : index
    %c0_45 = arith.constant 0 : index
    %99 = vector.load %arg7[%c0_44, %c0_45] : memref<1x128xf32, #tpu.memory_space<vmem>>, vector<1x128xf32>
    %100 = vector.broadcast %99 : vector<1x128xf32> to vector<8x128xf32>
    %101 = arith.addf %98, %100 : vector<8x128xf32>
    %cst_46 = arith.constant dense<0xFF800000> : vector<8xf32>
    %102 = vector.multi_reduction <maximumf>, %101, %cst_46 [1] : vector<8x128xf32> to vector<8xf32>
    %103 = vector.shape_cast %102 : vector<8xf32> to vector<8x1xf32>
    %104 = vector.broadcast %103 : vector<8x1xf32> to vector<8x128xf32>
    %105 = arith.subf %101, %104 : vector<8x128xf32>
    %106 = math.exp %105 : vector<8x128xf32>
    %cst_47 = arith.constant dense<0.000000e+00> : vector<8xf32>
    %107 = vector.multi_reduction <add>, %106, %cst_47 [1] : vector<8x128xf32> to vector<8xf32>
    %108 = vector.shape_cast %107 : vector<8xf32> to vector<8x1xf32>
    %109 = vector.broadcast %108 : vector<8x1xf32> to vector<8x128xf32>
    %110 = arith.divf %106, %109 : vector<8x128xf32>
    %111 = arith.index_cast %c1_i32 : i32 to index
    %c0_48 = arith.constant 0 : index
    %c0_49 = arith.constant 0 : index
    %112 = vector.load %arg2[%111, %c0_48, %c0_49] : memref<2x8x128xf32, #tpu.memory_space<vmem>>, vector<1x8x128xf32>
    %113 = vector.shape_cast %112 : vector<1x8x128xf32> to vector<8x128xf32>
    %114 = arith.addf %105, %113 : vector<8x128xf32>
    %cst_50 = arith.constant dense<0xFF800000> : vector<8xf32>
    %115 = vector.multi_reduction <maximumf>, %114, %cst_50 [1] : vector<8x128xf32> to vector<8xf32>
    %116 = vector.shape_cast %115 : vector<8xf32> to vector<8x1xf32>
    %117 = vector.broadcast %116 : vector<8x1xf32> to vector<8x128xf32>
    %118 = arith.cmpf oge, %114, %117 : vector<8x128xf32>
    %cst_51 = arith.constant 1.280000e+02 : f32
    %119 = vector.broadcast %cst_51 : f32 to vector<8x128xf32>
    %120 = arith.select %118, %9, %119 : vector<8x128xi1>, vector<8x128xf32>
    %cst_52 = arith.constant dense<0x7F800000> : vector<8xf32>
    %121 = vector.multi_reduction <minimumf>, %120, %cst_52 [1] : vector<8x128xf32> to vector<8xf32>
    %122 = vector.shape_cast %121 : vector<8xf32> to vector<8x1xf32>
    %123 = vector.broadcast %122 : vector<8x1xf32> to vector<8x128xf32>
    %124 = arith.cmpf oeq, %9, %123 : vector<8x128xf32>
    %125 = arith.extui %124 : vector<8x128xi1> to vector<8x128xi32>
    %126 = arith.sitofp %125 : vector<8x128xi32> to vector<8x128xf32>
    %127 = arith.index_cast %c1_i32 : i32 to index
    %c0_53 = arith.constant 0 : index
    %c0_54 = arith.constant 0 : index
    %128 = vector.load %arg8[%127, %c0_53, %c0_54] : memref<2x8x128xf32, #tpu.memory_space<vmem>>, vector<1x8x128xf32>
    %129 = vector.shape_cast %128 : vector<1x8x128xf32> to vector<8x128xf32>
    %130 = vector.shape_cast %110 : vector<8x128xf32> to vector<1x8x128xf32>
    tpu.vector_store %arg8[%127, %c0_53, %c0_54], %130 {strides = array<i32>} : memref<2x8x128xf32, #tpu.memory_space<vmem>>, vector<1x8x128xf32>,
    %131 = arith.truncf %126 : vector<8x128xf32> to vector<8x128xbf16>
    %132 = arith.index_cast %c1_i32 : i32 to index
    %c0_55 = arith.constant 0 : index
    %c0_56 = arith.constant 0 : index
    %133 = vector.load %arg9[%132, %c0_55, %c0_56] : memref<2x8x128xbf16, #tpu.memory_space<vmem>>, vector<1x8x128xbf16>
    %134 = vector.shape_cast %133 : vector<1x8x128xbf16> to vector<8x128xbf16>
    %135 = vector.shape_cast %131 : vector<8x128xbf16> to vector<1x8x128xbf16>
    tpu.vector_store %arg9[%132, %c0_55, %c0_56], %135 {strides = array<i32>} : memref<2x8x128xbf16, #tpu.memory_space<vmem>>, vector<1x8x128xbf16>,
    %c0_57 = arith.constant 0 : index
    %c0_58 = arith.constant 0 : index
    %136 = vector.load %arg10[%c0_57, %c0_58] : memref<8x256xf32, #tpu.memory_space<vmem>>, vector<8x128xf32>
    tpu.vector_store %arg10[%c0_57, %c0_58], %126 {strides = array<i32>} : memref<8x256xf32, #tpu.memory_space<vmem>>, vector<8x128xf32>,
    %c0_59 = arith.constant 0 : index
    %c128_60 = arith.constant 128 : index
    %137 = vector.load %arg10[%c0_59, %c128_60] : memref<8x256xf32, #tpu.memory_space<vmem>>, vector<8x128xf32>
    tpu.vector_store %arg10[%c0_59, %c128_60], %95 {strides = array<i32>} : memref<8x256xf32, #tpu.memory_space<vmem>>, vector<8x128xf32>,
    %c2_i32 = arith.constant 2 : i32
    return
  }
  func.func @transform_0(%arg0: i32) -> (i32, i32) {
    %c0_i32 = arith.constant 0 : i32
    %c0_i32_0 = arith.constant 0 : i32
    return %arg0, %c0_i32 : i32, i32
  }
  func.func @transform_1(%arg0: i32) -> (i32, i32, i32) {
    %c0_i32 = arith.constant 0 : i32
    %c0_i32_0 = arith.constant 0 : i32
    %c0_i32_1 = arith.constant 0 : i32
    return %c0_i32, %arg0, %c0_i32_0 : i32, i32, i32
  }
  func.func @transform_2(%arg0: i32) -> (i32, i32) {
    %c0_i32 = arith.constant 0 : i32
    %c0_i32_0 = arith.constant 0 : i32
    %c0_i32_1 = arith.constant 0 : i32
    return %c0_i32, %c0_i32_0 : i32, i32
  }
  func.func @transform_3(%arg0: i32) -> (i32, i32) {
    %c0_i32 = arith.constant 0 : i32
    %c0_i32_0 = arith.constant 0 : i32
    %c0_i32_1 = arith.constant 0 : i32
    return %c0_i32, %c0_i32_0 : i32, i32
  }
  func.func @transform_4(%arg0: i32) -> (i32, i32) {
    %c0_i32 = arith.constant 0 : i32
    %c0_i32_0 = arith.constant 0 : i32
    %c0_i32_1 = arith.constant 0 : i32
    return %c0_i32, %c0_i32_0 : i32, i32
  }
  func.func @transform_5(%arg0: i32) -> (i32, i32) {
    %c0_i32 = arith.constant 0 : i32
    %c0_i32_0 = arith.constant 0 : i32
    %c0_i32_1 = arith.constant 0 : i32
    return %c0_i32, %c0_i32_0 : i32, i32
  }
  func.func @transform_6(%arg0: i32) -> (i32, i32) {
    %c0_i32 = arith.constant 0 : i32
    %c0_i32_0 = arith.constant 0 : i32
    %c0_i32_1 = arith.constant 0 : i32
    return %c0_i32, %c0_i32_0 : i32, i32
  }
  func.func @transform_7(%arg0: i32) -> (i32, i32, i32) {
    %c0_i32 = arith.constant 0 : i32
    %c0_i32_0 = arith.constant 0 : i32
    %c0_i32_1 = arith.constant 0 : i32
    return %c0_i32, %arg0, %c0_i32_0 : i32, i32, i32
  }
  func.func @transform_8(%arg0: i32) -> (i32, i32, i32) {
    %c0_i32 = arith.constant 0 : i32
    %c0_i32_0 = arith.constant 0 : i32
    %c0_i32_1 = arith.constant 0 : i32
    return %c0_i32, %arg0, %c0_i32_0 : i32, i32, i32
  }
}

</mosaic_0001>

<bundles_post_ra>
// kernel: tpu_custom_call.1
= control target key start
LH: loop header
LB: loop body
LE: loop exit
PB: predicated region body
PF: predicated region fallthrough
CT: control target
= control target key end

     0   :  { %14 = vsyncpa [#allocation4], 0  ;;  %s2657_s0 = inlined_call_operand.hbm [shape: f32[8,128], index: 0, kind: input, shape index: {}]   ;;  %s2658_s1 = inlined_call_operand.hbm [shape: f32[2,8,128], index: 1, kind: input, shape index: {}]   ;;  %s2659_s2 = inlined_call_operand.hbm [shape: f32[128,512], index: 2, kind: input, shape index: {}]   ;;  %s2660_s3 = inlined_call_operand.hbm [shape: bf16[256,512], index: 3, kind: input, shape index: {}]   ;;  %s2661_s4 = inlined_call_operand.vmem [shape: f32[1,512], index: 4, kind: input, shape index: {}]   ;;  %s2662_s5 = inlined_call_operand.hbm [shape: bf16[128,128], index: 5, kind: input, shape index: {}]   ;;  %s2663_s6 = inlined_call_operand.vmem [shape: f32[1,128], index: 6, kind: input, shape index: {}]   ;;  %s2664_s7 = inlined_call_operand.hbm [shape: f32[2,8,128], index: 7, kind: output, shape index: {0}]   ;;  %s2665_s8 = inlined_call_operand.hbm [shape: bf16[2,8,128], index: 8, kind: output, shape index: {1}]  }
   0x1   :  { %15 = vsyncpa [#allocation7], 0 }
   0x2   :  { %16 = vsyncpa [#allocation10], 0 }
   0x3   :  { %17 = vsyncpa [#allocation5], 0 }
   0x4   :  { %18 = vsyncpa [#allocation14], 0  ;;  %s2212_s27 = smov [#allocation6]   ;;  %s2048_s9 = scalar_lea.hbm %s2658_s1, 256 }
   0x5   :  { %s34_s28 = sshll.u32 %s2212_s27, 4  ;;  %p2049_p0 = scmp.ne.s32.totalorder %s2658_s1, %s2048_s9  ;;  %s35_s28 = int_to_ptr.vmem [resolvable:$true] %s34_s28 }
   0x6   :  { %p2052_p1 = scmp.lt.u32.totalorder %s2048_s9, %s2658_s1 }
   0x8   :  { %p2054_p2 = pnand %p2052_p1, %p2049_p0 }
   0xa   :  { %2057 = shalt.err (!%p2054_p2)
}
   0xb   :  { %s2058_s14 = scalar_lea.vmem %s35_s28, 256  ;;  %p2063_p4 = scmp.lt.s32.totalorder %s35_s28, %s35_s28 }
   0xc   :  { %p2059_p3 = scmp.ne.s32.totalorder %s35_s28, %s2058_s14  ;;  %p2064_p5 = scmp.lt.s32.totalorder %s2058_s14, %s2058_s14 }
   0xe   :  { %p2065_p6 = por %p2064_p5, %p2063_p4 }
  0x10   :  { %p2066_p7 = pnand %p2065_p6, %p2059_p3 }
  0x12   :  { %2069 = shalt.err (!%p2066_p7)
}
  0x13   :  { %s2213_s15 = smov 128   ;;  %s2214_s16 = smov 8  }
  0x14   :  { %40 = dma.hbm_to_vmem [thread:$0]  %s2658_s1, 256, %s35_s28, [#allocation7], %s2213_s15, %s2213_s15, %s2214_s16  }
  0x15   :  { %s2215_s19 = smov [#allocation9]   ;;  %s2070_s23 = scalar_lea.hbm %s2660_s3, 8192 }
  0x16   :  { %s58_s20 = sshll.u32 %s2215_s19, 4  ;;  %p2071_p8 = scmp.ne.s32.totalorder %s2660_s3, %s2070_s23  ;;  %s59_s20 = int_to_ptr.vmem [resolvable:$true] %s58_s20 }
  0x17   :  { %p2074_p9 = scmp.lt.u32.totalorder %s2070_s23, %s2660_s3 }
  0x19   :  { %p2076_p10 = pnand %p2074_p9, %p2071_p8 }
  0x1b   :  { %2079 = shalt.err (!%p2076_p10)
}
  0x1c   :  { %s2080_s29 = scalar_lea.vmem %s59_s20, 8192  ;;  %p2085_p12 = scmp.lt.s32.totalorder %s59_s20, %s59_s20 }
  0x1d   :  { %p2081_p11 = scmp.ne.s32.totalorder %s59_s20, %s2080_s29  ;;  %p2086_p13 = scmp.lt.s32.totalorder %s2080_s29, %s2080_s29 }
  0x1f   :  { %p2087_p0 = por %p2086_p13, %p2085_p12 }
  0x21   :  { %p2088_p1 = pnand %p2087_p0, %p2081_p11 }
  0x23   :  { %2091 = shalt.err (!%p2088_p1)
}
  0x24   :  { %s2216_s1 = smov 256   ;;  %s2217_s28 = smov 16  }
  0x25   :  { %64 = dma.hbm_to_vmem [thread:$0]  %s2660_s3, 8192, %s59_s20, [#allocation10], %s2216_s1, %s2216_s1, %s2217_s28  }
  0x26   :  { %s2218_s10 = smov [#allocation3]   ;;  %s2219_s12 = smov [#allocation8]  }
  0x27   :  { %s25_s11 = sshll.u32 %s2218_s10, 4  ;;  %s46_s13 = sshll.u32 %s2219_s12, 4  ;;  %s26_s11 = int_to_ptr.vmem [resolvable:$true] %s25_s11  ;;  %s2303_s13 = int_to_ptr.vmem [resolvable:$true] %s46_s13 }
  0x28   :  { %s2092_s18 = scalar_lea.hbm %s2657_s0, 128 }
  0x29   :  { %p2093_p2 = scmp.ne.s32.totalorder %s2657_s0, %s2092_s18  ;;  %p2096_p3 = scmp.lt.u32.totalorder %s2092_s18, %s2657_s0 }
  0x2b   :  { %p2098_p4 = pnand %p2096_p3, %p2093_p2 }
  0x2d   :  { %2101 = shalt.err (!%p2098_p4)
}
  0x2e   :  { %s2102_s3 = scalar_lea.vmem %s26_s11, 128  ;;  %p2107_p6 = scmp.lt.s32.totalorder %s26_s11, %s26_s11 }
  0x2f   :  { %p2103_p5 = scmp.ne.s32.totalorder %s26_s11, %s2102_s3  ;;  %p2108_p7 = scmp.lt.s32.totalorder %s2102_s3, %s2102_s3 }
  0x31   :  { %p2109_p8 = por %p2108_p7, %p2107_p6 }
  0x33   :  { %p2110_p9 = pnand %p2109_p8, %p2103_p5 }
  0x35   :  { %2113 = shalt.err (!%p2110_p9)
}
  0x36   :  { %28 = dma.hbm_to_vmem [thread:$0]  %s2657_s0, 128, %s26_s11, [#allocation4]  }
  0x37   :  { %s2114_s27 = scalar_lea.hbm %s2659_s2, 8192 }
  0x38   :  { %p2115_p10 = scmp.ne.s32.totalorder %s2659_s2, %s2114_s27  ;;  %p2118_p11 = scmp.lt.u32.totalorder %s2114_s27, %s2659_s2 }
  0x3a   :  { %p2120_p12 = pnand %p2118_p11, %p2115_p10 }
  0x3c   :  { %2123 = shalt.err (!%p2120_p12)
}
  0x3d   :  { %s2124_s9 = scalar_lea.vmem %s2303_s13, 8192  ;;  %p2129_p0 = scmp.lt.s32.totalorder %s2303_s13, %s2303_s13 }
  0x3e   :  { %p2125_p13 = scmp.ne.s32.totalorder %s2303_s13, %s2124_s9  ;;  %p2130_p1 = scmp.lt.s32.totalorder %s2124_s9, %s2124_s9 }
  0x40   :  { %p2131_p2 = por %p2130_p1, %p2129_p0 }
  0x42   :  { %p2132_p3 = pnand %p2131_p2, %p2125_p13 }
  0x44   :  { %2135 = shalt.err (!%p2132_p3)
}
  0x45   :  { %s2220_s0 = smov 512   ;;  %s2221_s10 = smov 32  }
  0x46   :  { %52 = dma.hbm_to_vmem [thread:$0]  %s2659_s2, 8192, %s2303_s13, [#allocation7], %s2220_s0, %s2220_s0, %s2221_s10  }
  0x47   :  { %s2222_s14 = smov [#allocation11]   ;;  %s2136_s21 = scalar_lea.hbm %s2662_s5, 1024 }
  0x48   :  { %s72_s17 = sshll.u32 %s2222_s14, 4  ;;  %p2137_p4 = scmp.ne.s32.totalorder %s2662_s5, %s2136_s21  ;;  %s73_s17 = int_to_ptr.vmem [resolvable:$true] %s72_s17 }
  0x49   :  { %p2140_p5 = scmp.lt.u32.totalorder %s2136_s21, %s2662_s5 }
  0x4b   :  { %p2142_p6 = pnand %p2140_p5, %p2137_p4 }
  0x4d   :  { %2145 = shalt.err (!%p2142_p6)
}
  0x4e   :  { %s2146_s24 = scalar_lea.vmem %s73_s17, 1024  ;;  %p2151_p8 = scmp.lt.s32.totalorder %s73_s17, %s73_s17 }
  0x4f   :  { %p2147_p7 = scmp.ne.s32.totalorder %s73_s17, %s2146_s24  ;;  %p2152_p9 = scmp.lt.s32.totalorder %s2146_s24, %s2146_s24 }
  0x51   :  { %p2153_p10 = por %p2152_p9, %p2151_p8 }
  0x53   :  { %p2154_p11 = pnand %p2153_p10, %p2147_p7 }
  0x55   :  { %2157 = shalt.err (!%p2154_p11)
}
  0x56   :  { %s2223_s2 = smov 64   ;;  %s2224_s13 = smov 4  }
  0x57   :  { %78 = dma.hbm_to_vmem [thread:$0]  %s2662_s5, 1024, %s73_s17, [#allocation10], %s2223_s2, %s2223_s2, %s2224_s13  }
  0x58   :  { %2202 = dma.done.wait [#allocation4], 128  }
  0x59   :  { %2203 = vsyncadd [#allocation4], 4294967168 }
  0x5a   :  { %2204 = dma.done.wait [#allocation7], 8448  }
  0x5b   :  { %2205 = vsyncadd [#allocation7], 4294958848 }
  0x5c   :  { %2206 = dma.done.wait [#allocation10], 9216  }
  0x5d   :  { %2207 = vsyncadd [#allocation10], 4294958080  ;;  %v2668_v0 = vmov 0.0   ;;  %v101_v1 = vld [vmem:[#allocation8 + $0x8] sm:$0xff]  ;;  %v103_v3 = vld [vmem:[#allocation8 + $0x18] sm:$0xff]  ;;  %vm2227_vm0 = vmmov 0  }
  0x5e   :  { %245 = vmatprep.mubr.f32.mxu0 %v2668_v0  ;;  %315 = vmatprep.mubr.f32.mxu1 %v2668_v0  ;;  %v105_v2 = vld [vmem:[#allocation8 + $0x28] sm:$0xff]  ;;  %v107_v5 = vld [vmem:[#allocation8 + $0x38] sm:$0xff]  ;;  %v100_v6 = vld [vmem:[#allocation8] sm:$0xff] }
  0x5f   :  { %v1827_v4 = vpack.c.bf16 %v105_v2, %v101_v1  ;;  %v104_v7 = vld [vmem:[#allocation8 + $0x20] sm:$0xff]  ;;  %v1859_v8 = vpack.c.bf16 %v107_v5, %v103_v3  ;;  %v102_v10 = vld [vmem:[#allocation8 + $0x10] sm:$0xff]  ;;  %v109_v12 = vld [vmem:[#allocation8 + $0x48] sm:$0xff] }
  0x60   :  { %v1829_v9 = vpack.c.bf16 %v104_v7, %v100_v6  ;;  %v106_v11 = vld [vmem:[#allocation8 + $0x30] sm:$0xff]  ;;  %v113_v14 = vld [vmem:[#allocation8 + $0x68] sm:$0xff]  ;;  %v111_v15 = vld [vmem:[#allocation8 + $0x58] sm:$0xff] }
  0x61   :  { %1828 = vmatprep.subr.bf16.mxu0 %v1827_v4  ;;  %v1861_v13 = vpack.c.bf16 %v106_v11, %v102_v10  ;;  %v115_v16 = vld [vmem:[#allocation8 + $0x78] sm:$0xff]  ;;  %1860 = vmatprep.subr.bf16.mxu1 %v1859_v8  ;;  %v1831_v17 = vpack.c.bf16 %v113_v14, %v109_v12  ;;  %v108_v19 = vld [vmem:[#allocation8 + $0x40] sm:$0xff]  ;;  %v110_v21 = vld [vmem:[#allocation8 + $0x50] sm:$0xff] }
  0x62   :  { %1830 = vmatpush1.bf16.msra.mxu0 %v1829_v9  ;;  %v1863_v18 = vpack.c.bf16 %v115_v16, %v111_v15  ;;  %v112_v20 = vld [vmem:[#allocation8 + $0x60] sm:$0xff]  ;;  %v114_v23 = vld [vmem:[#allocation8 + $0x70] sm:$0xff]  ;;  %v117_v24 = vld [vmem:[#allocation8 + $0x88] sm:$0xff] }
  0x63   :  { %1862 = vmatpush1.bf16.msra.mxu1 %v1861_v13  ;;  %v1833_v22 = vpack.c.bf16 %v112_v20, %v108_v19  ;;  %v121_v25 = vld [vmem:[#allocation8 + $0xa8] sm:$0xff]  ;;  %1832 = vmatprep.subr.bf16.mxu0 %v1831_v17  ;;  %v1865_v26 = vpack.c.bf16 %v114_v23, %v110_v21  ;;  %v119_v28 = vld [vmem:[#allocation8 + $0x98] sm:$0xff]  ;;  %v116_v30 = vld [vmem:[#allocation8 + $0x80] sm:$0xff] }
  0x64   :  { %1864 = vmatprep.subr.bf16.mxu1 %v1863_v18  ;;  %v1835_v27 = vpack.c.bf16 %v121_v25, %v117_v24  ;;  %v123_v29 = vld [vmem:[#allocation8 + $0xb8] sm:$0xff]  ;;  %v120_v32 = vld [vmem:[#allocation8 + $0xa0] sm:$0xff]  ;;  %v118_v33 = vld [vmem:[#allocation8 + $0x90] sm:$0xff] }
  0x65   :  { %v1867_v31 = vpack.c.bf16 %v123_v29, %v119_v28  ;;  %v122_v34 = vld [vmem:[#allocation8 + $0xb0] sm:$0xff]  ;;  %v1837_v35 = vpack.c.bf16 %v120_v32, %v116_v30  ;;  %v125_v36 = vld [vmem:[#allocation8 + $0xc8] sm:$0xff]  ;;  %v127_v38 = vld [vmem:[#allocation8 + $0xd8] sm:$0xff] }
  0x66   :  { %1834 = vmatpush1.bf16.msra.mxu0 %v1833_v22  ;;  %v129_v37 = vld [vmem:[#allocation8 + $0xe8] sm:$0xff]  ;;  %v1869_v39 = vpack.c.bf16 %v122_v34, %v118_v33  ;;  %v131_v41 = vld [vmem:[#allocation8 + $0xf8] sm:$0xff]  ;;  %v124_v42 = vld [vmem:[#allocation8 + $0xc0] sm:$0xff] }
  0x67   :  { %1866 = vmatpush1.bf16.msra.mxu1 %v1865_v26  ;;  %1836 = vmatprep.subr.bf16.mxu0 %v1835_v27  ;;  %v1839_v40 = vpack.c.bf16 %v129_v37, %v125_v36  ;;  %v128_v43 = vld [vmem:[#allocation8 + $0xe0] sm:$0xff]  ;;  %v1871_v44 = vpack.c.bf16 %v131_v41, %v127_v38  ;;  %v126_v45 = vld [vmem:[#allocation8 + $0xd0] sm:$0xff]  ;;  %v133_v47 = vld [vmem:[#allocation8 + $0x108] sm:$0xff] }
  0x68   :  { %1868 = vmatprep.subr.bf16.mxu1 %v1867_v31  ;;  %v130_v46 = vld [vmem:[#allocation8 + $0xf0] sm:$0xff]  ;;  %v137_v48 = vld [vmem:[#allocation8 + $0x128] sm:$0xff]  ;;  %v135_v49 = vld [vmem:[#allocation8 + $0x118] sm:$0xff]  ;;  %v1841_v51 = vpack.c.bf16 %v128_v43, %v124_v42 }
  0x69   :  { %v139_v50 = vld [vmem:[#allocation8 + $0x138] sm:$0xff]  ;;  %v1873_v52 = vpack.c.bf16 %v130_v46, %v126_v45  ;;  %v1843_v53 = vpack.c.bf16 %v137_v48, %v133_v47  ;;  %v132_v54 = vld [vmem:[#allocation8 + $0x100] sm:$0xff]  ;;  %v134_v56 = vld [vmem:[#allocation8 + $0x110] sm:$0xff]  ;;  %v2666_v45 = vmov 0.0|0.0  }
  0x6a   :  { %1838 = vmatpush1.bf16.msra.mxu0 %v1837_v35  ;;  %v136_v55 = vld [vmem:[#allocation8 + $0x120] sm:$0xff]  ;;  %v1875_v57 = vpack.c.bf16 %v139_v50, %v135_v49  ;;  %v138_v58 = vld [vmem:[#allocation8 + $0x130] sm:$0xff]  ;;  %v141_v59 = vld [vmem:[#allocation8 + $0x148] sm:$0xff] }
  0x6b   :  { %1870 = vmatpush1.bf16.msra.mxu1 %v1869_v39  ;;  %1840 = vmatprep.subr.bf16.mxu0 %v1839_v40  ;;  %v145_v60 = vld [vmem:[#allocation8 + $0x168] sm:$0xff]  ;;  %v143_v61 = vld [vmem:[#allocation8 + $0x158] sm:$0xff]  ;;  %v1845_v63 = vpack.c.bf16 %v136_v55, %v132_v54  ;;  %v1877_v1 = vpack.c.bf16 %v138_v58, %v134_v56  ;;  %v140_v3 = vld [vmem:[#allocation8 + $0x140] sm:$0xff] }
  0x6c   :  { %1872 = vmatprep.subr.bf16.mxu1 %v1871_v44  ;;  %v147_v62 = vld [vmem:[#allocation8 + $0x178] sm:$0xff]  ;;  %v1847_v2 = vpack.c.bf16 %v145_v60, %v141_v59  ;;  %v144_v4 = vld [vmem:[#allocation8 + $0x160] sm:$0xff]  ;;  %v142_v5 = vld [vmem:[#allocation8 + $0x150] sm:$0xff] }
  0x6d   :  { %v1879_v6 = vpack.c.bf16 %v147_v62, %v143_v61  ;;  %v146_v7 = vld [vmem:[#allocation8 + $0x170] sm:$0xff]  ;;  %v149_v8 = vld [vmem:[#allocation8 + $0x188] sm:$0xff]  ;;  %v151_v10 = vld [vmem:[#allocation8 + $0x198] sm:$0xff]  ;;  %v1849_v12 = vpack.c.bf16 %v144_v4, %v140_v3 }
  0x6e   :  { %1842 = vmatpush1.bf16.msra.mxu0 %v1841_v51  ;;  %v153_v9 = vld [vmem:[#allocation8 + $0x1a8] sm:$0xff]  ;;  %v155_v11 = vld [vmem:[#allocation8 + $0x1b8] sm:$0xff]  ;;  %v148_v13 = vld [vmem:[#allocation8 + $0x180] sm:$0xff]  ;;  %v1881_v16 = vpack.c.bf16 %v146_v7, %v142_v5 }
  0x6f   :  { %1874 = vmatpush1.bf16.msra.mxu1 %v1873_v52  ;;  %1844 = vmatprep.subr.bf16.mxu0 %v1843_v53  ;;  %v152_v14 = vld [vmem:[#allocation8 + $0x1a0] sm:$0xff]  ;;  %v150_v15 = vld [vmem:[#allocation8 + $0x190] sm:$0xff]  ;;  %v1851_v17 = vpack.c.bf16 %v153_v9, %v149_v8  ;;  %v157_v19 = vld [vmem:[#allocation8 + $0x1c8] sm:$0xff]  ;;  %v1883_v20 = vpack.c.bf16 %v155_v11, %v151_v10 }
  0x70   :  { %1876 = vmatprep.subr.bf16.mxu1 %v1875_v57  ;;  %v154_v18 = vld [vmem:[#allocation8 + $0x1b0] sm:$0xff]  ;;  %v161_v21 = vld [vmem:[#allocation8 + $0x1e8] sm:$0xff]  ;;  %v159_v22 = vld [vmem:[#allocation8 + $0x1d8] sm:$0xff]  ;;  %v1853_v24 = vpack.c.bf16 %v152_v14, %v148_v13 }
  0x71   :  { %v163_v23 = vld [vmem:[#allocation8 + $0x1f8] sm:$0xff]  ;;  %v1885_v25 = vpack.c.bf16 %v154_v18, %v150_v15  ;;  %v1855_v26 = vpack.c.bf16 %v161_v21, %v157_v19  ;;  %v156_v27 = vld [vmem:[#allocation8 + $0x1c0] sm:$0xff]  ;;  %v158_v30 = vld [vmem:[#allocation8 + $0x1d0] sm:$0xff] }
  0x72   :  { %1846 = vmatpush1.bf16.msra.mxu0 %v1845_v63  ;;  %v160_v28 = vld [vmem:[#allocation8 + $0x1e0] sm:$0xff]  ;;  %v1887_v29 = vpack.c.bf16 %v163_v23, %v159_v22  ;;  %v162_v31 = vld [vmem:[#allocation8 + $0x1f0] sm:$0xff]  ;;  %v2353_v35 = vld [vmem:[#allocation9 + $0xc] ss:$16 sps:$4 sm:$0xff]  }
  0x73   :  { %1878 = vmatpush1.bf16.msra.mxu1 %v1877_v1  ;;  %1848 = vmatprep.subr.bf16.mxu0 %v1847_v2  ;;  %v1857_v32 = vpack.c.bf16 %v160_v28, %v156_v27  ;;  %v1889_v33 = vpack.c.bf16 %v162_v31, %v158_v30  ;;  %v2351_v34 = vld [vmem:[#allocation9 + $0x4] ss:$16 sps:$4 sm:$0xff]   ;;  %v99_v36 = vld [vmem:[#allocation3] sm:$0xff]  ;;  %v2355_v37 = vld [vmem:[#allocation9] ss:$16 sps:$4 sm:$0xff]  }
  0x74   :  { %1880 = vmatprep.subr.bf16.mxu1 %v1879_v6  ;;  %v2358_v38 = vld [vmem:[#allocation9 + $0x8] ss:$16 sps:$4 sm:$0xff]   ;;  %v2360_v39 = vld [vmem:[#allocation9 + $0x24] ss:$16 sps:$4 sm:$0xff]   ;;  %v2363_v40 = vld [vmem:[#allocation9 + $0x2c] ss:$16 sps:$4 sm:$0xff]  }
  0x75   :  { %v2366_v41 = vld [vmem:[#allocation9 + $0x20] ss:$16 sps:$4 sm:$0xff]   ;;  %v2370_v42 = vld [vmem:[#allocation9 + $0x28] ss:$16 sps:$4 sm:$0xff]   ;;  %v2372_v43 = vld [vmem:[#allocation9 + $0x44] ss:$16 sps:$4 sm:$0xff]  }
  0x76   :  { %1850 = vmatpush1.bf16.msra.mxu0 %v1849_v12  ;;  %v2375_v44 = vld [vmem:[#allocation9 + $0x4c] ss:$16 sps:$4 sm:$0xff]   ;;  %v2380_v46 = vld [vmem:[#allocation9 + $0x40] ss:$16 sps:$4 sm:$0xff]   ;;  %v2384_v47 = vld [vmem:[#allocation9 + $0x48] ss:$16 sps:$4 sm:$0xff]  }
  0x77   :  { %1882 = vmatpush1.bf16.msra.mxu1 %v1881_v16  ;;  %1852 = vmatprep.subr.bf16.mxu0 %v1851_v17  ;;  %v2386_v48 = vld [vmem:[#allocation9 + $0x64] ss:$16 sps:$4 sm:$0xff]   ;;  %v2389_v49 = vld [vmem:[#allocation9 + $0x6c] ss:$16 sps:$4 sm:$0xff]   ;;  %v2392_v50 = vld [vmem:[#allocation9 + $0x60] ss:$16 sps:$4 sm:$0xff]  }
  0x78   :  { %1884 = vmatprep.subr.bf16.mxu1 %v1883_v20  ;;  %v2396_v51 = vld [vmem:[#allocation9 + $0x68] ss:$16 sps:$4 sm:$0xff]   ;;  %v2398_v52 = vld [vmem:[#allocation9 + $0x84] ss:$16 sps:$4 sm:$0xff]   ;;  %v2401_v53 = vld [vmem:[#allocation9 + $0x8c] ss:$16 sps:$4 sm:$0xff]  }
  0x79   :  { %v2404_v54 = vld [vmem:[#allocation9 + $0x80] ss:$16 sps:$4 sm:$0xff]   ;;  %v2408_v55 = vld [vmem:[#allocation9 + $0x88] ss:$16 sps:$4 sm:$0xff]   ;;  %v2410_v56 = vld [vmem:[#allocation9 + $0xa4] ss:$16 sps:$4 sm:$0xff]  }
  0x7a   :  { %1854 = vmatpush1.bf16.msra.mxu0 %v1853_v24  ;;  %v2413_v57 = vld [vmem:[#allocation9 + $0xac] ss:$16 sps:$4 sm:$0xff]   ;;  %v2416_v58 = vld [vmem:[#allocation9 + $0xa0] ss:$16 sps:$4 sm:$0xff]   ;;  %v2420_v59 = vld [vmem:[#allocation9 + $0xa8] ss:$16 sps:$4 sm:$0xff]  }
  0x7b   :  { %1886 = vmatpush1.bf16.msra.mxu1 %v1885_v25  ;;  %1856 = vmatprep.subr.bf16.mxu0 %v1855_v26  ;;  %v2422_v60 = vld [vmem:[#allocation9 + $0xc4] ss:$16 sps:$4 sm:$0xff]   ;;  %v2425_v61 = vld [vmem:[#allocation9 + $0xcc] ss:$16 sps:$4 sm:$0xff]   ;;  %v2428_v62 = vld [vmem:[#allocation9 + $0xc0] ss:$16 sps:$4 sm:$0xff]  }
  0x7c   :  { %1888 = vmatprep.subr.bf16.mxu1 %v1887_v29  ;;  %v2432_v63 = vld [vmem:[#allocation9 + $0xc8] ss:$16 sps:$4 sm:$0xff]   ;;  %v2434_v1 = vld [vmem:[#allocation9 + $0xe4] ss:$16 sps:$4 sm:$0xff]   ;;  %v2437_v2 = vld [vmem:[#allocation9 + $0xec] ss:$16 sps:$4 sm:$0xff]  }
  0x7d   :  { %v2440_v3 = vld [vmem:[#allocation9 + $0xe0] ss:$16 sps:$4 sm:$0xff]   ;;  %v2444_v4 = vld [vmem:[#allocation9 + $0xe8] ss:$16 sps:$4 sm:$0xff]   ;;  %v2446_v5 = vld [vmem:[#allocation9 + $0x104] ss:$16 sps:$4 sm:$0xff]  }
  0x7e   :  { %1858 = vmatpush1.bf16.msra.mxu0 %v1857_v32  ;;  %v2449_v6 = vld [vmem:[#allocation9 + $0x100] ss:$16 sps:$4 sm:$0xff]   ;;  %v2451_v7 = vld [vmem:[#allocation9 + $0x10c] ss:$16 sps:$4 sm:$0xff]   ;;  %v2453_v8 = vld [vmem:[#allocation9 + $0x108] ss:$16 sps:$4 sm:$0xff]  }
  0x7f   :  { %1890 = vmatpush1.bf16.msra.mxu1 %v1889_v33  ;;  %713 = vmatprep.subr.bf16.mxu0 %v2351_v34  ;;  %v2456_v9 = vld [vmem:[#allocation9 + $0x124] ss:$16 sps:$4 sm:$0xff]   ;;  %v2458_v10 = vld [vmem:[#allocation9 + $0x12c] ss:$16 sps:$4 sm:$0xff]   ;;  %v2463_v11 = vld [vmem:[#allocation9 + $0x120] ss:$16 sps:$4 sm:$0xff]  }
  0x80   :  { %753 = vmatprep.subr.bf16.mxu1 %v2353_v35  ;;  %v2465_v12 = vld [vmem:[#allocation9 + $0x128] ss:$16 sps:$4 sm:$0xff]   ;;  %v2467_v13 = vld [vmem:[#allocation9 + $0x144] ss:$16 sps:$4 sm:$0xff]   ;;  %v2470_v14 = vld [vmem:[#allocation9 + $0x14c] ss:$16 sps:$4 sm:$0xff]  }
  0x81   :  { %246 = vmatmul.mubr.f32.vlgmr.msra.gmra.mrb[0].mxu0 %v99_v36  ;;  %v2475_v15 = vld [vmem:[#allocation9 + $0x140] ss:$16 sps:$4 sm:$0xff]   ;;  %v2477_v16 = vld [vmem:[#allocation9 + $0x148] ss:$16 sps:$4 sm:$0xff]   ;;  %v2479_v17 = vld [vmem:[#allocation9 + $0x164] ss:$16 sps:$4 sm:$0xff]  }
  0x82   :  { %316 = vmatmul.mubr.f32.vlgmr.msra.gmra.mrb[0].mxu1 %v99_v36  ;;  %714 = vmatpush1.bf16.msra.mxu0 %v2355_v37  ;;  %v2482_v18 = vld [vmem:[#allocation9 + $0x16c] ss:$16 sps:$4 sm:$0xff]   ;;  %v2488_v19 = vld [vmem:[#allocation9 + $0x160] ss:$16 sps:$4 sm:$0xff]   ;;  %v2492_v20 = vld [vmem:[#allocation9 + $0x168] ss:$16 sps:$4 sm:$0xff]  }
  0x83   :  { %754 = vmatpush1.bf16.msra.mxu1 %v2358_v38  ;;  %715 = vmatprep.subr.bf16.mxu0 %v2360_v39  ;;  %v1984_v21 = vld [vmem:[#allocation9 + $0x184] ss:$16 sps:$4 sm:$0xff]   ;;  %v2495_v22 = vld [vmem:[#allocation9 + $0x18c] ss:$16 sps:$4 sm:$0xff]   ;;  %v1982_v23 = vld [vmem:[#allocation9 + $0x180] ss:$16 sps:$4 sm:$0xff]  }
  0x84   :  { %755 = vmatprep.subr.bf16.mxu1 %v2363_v40  ;;  %745 = vmatprep.mubr.bf16.mxu0 %v2666_v45  ;;  %v2499_v24 = vld [vmem:[#allocation9 + $0x188] ss:$16 sps:$4 sm:$0xff]   ;;  %v1990_v25 = vld [vmem:[#allocation9 + $0x1a4] ss:$16 sps:$4 sm:$0xff]   ;;  %v2502_v26 = vld [vmem:[#allocation9 + $0x1ac] ss:$16 sps:$4 sm:$0xff]  }
  0x85   :  { %785 = vmatprep.mubr.bf16.mxu1 %v2666_v45  ;;  %2672 = vst [vmem:[#allocation20_spill] sm:$0xff] %v2502_v26  ;;  %v1988_v27 = vld [vmem:[#allocation9 + $0x1a0] ss:$16 sps:$4 sm:$0xff]   ;;  %v2505_v28 = vld [vmem:[#allocation9 + $0x1a8] ss:$16 sps:$4 sm:$0xff]  }
  0x86   :  { %716 = vmatpush1.bf16.msra.mxu0 %v2366_v41  ;;  %2673 = vst [vmem:[#allocation21_spill] sm:$0xff] %v2505_v28  ;;  %v1996_v29 = vld [vmem:[#allocation9 + $0x1c4] ss:$16 sps:$4 sm:$0xff]   ;;  %v2508_v30 = vld [vmem:[#allocation9 + $0x1cc] ss:$16 sps:$4 sm:$0xff]  }
  0x87   :  { %756 = vmatpush1.bf16.msra.mxu1 %v2370_v42  ;;  %717 = vmatprep.subr.bf16.mxu0 %v2372_v43  ;;  %v1994_v31 = vld [vmem:[#allocation9 + $0x1c0] ss:$16 sps:$4 sm:$0xff]   ;;  %v2511_v32 = vld [vmem:[#allocation9 + $0x1c8] ss:$16 sps:$4 sm:$0xff]   ;;  %v2002_v33 = vld [vmem:[#allocation9 + $0x1e4] ss:$16 sps:$4 sm:$0xff]  }
  0x88   :  { %757 = vmatprep.subr.bf16.mxu1 %v2375_v44  ;;  %v2514_v36 = vld [vmem:[#allocation9 + $0x1ec] ss:$16 sps:$4 sm:$0xff]   ;;  %v2000_v45 = vld [vmem:[#allocation9 + $0x1e0] ss:$16 sps:$4 sm:$0xff]   ;;  %v2517_v0 = vld [vmem:[#allocation9 + $0x1e8] ss:$16 sps:$4 sm:$0xff]  }
  0x8a   :  { %718 = vmatpush1.bf16.msra.mxu0 %v2380_v46 }
  0x8b   :  { %758 = vmatpush1.bf16.msra.mxu1 %v2384_v47  ;;  %719 = vmatprep.subr.bf16.mxu0 %v2386_v48 }
  0x8c   :  { %759 = vmatprep.subr.bf16.mxu1 %v2389_v49 }
  0x8e   :  { %720 = vmatpush1.bf16.msra.mxu0 %v2392_v50 }
  0x8f   :  { %760 = vmatpush1.bf16.msra.mxu1 %v2396_v51  ;;  %721 = vmatprep.subr.bf16.mxu0 %v2398_v52 }
  0x90   :  { %761 = vmatprep.subr.bf16.mxu1 %v2401_v53 }
  0x92   :  { %722 = vmatpush1.bf16.msra.mxu0 %v2404_v54 }
  0x93   :  { %762 = vmatpush1.bf16.msra.mxu1 %v2408_v55  ;;  %723 = vmatprep.subr.bf16.mxu0 %v2410_v56 }
  0x94   :  { %763 = vmatprep.subr.bf16.mxu1 %v2413_v57 }
  0x96   :  { %724 = vmatpush1.bf16.msra.mxu0 %v2416_v58 }
  0x97   :  { %764 = vmatpush1.bf16.msra.mxu1 %v2420_v59  ;;  %725 = vmatprep.subr.bf16.mxu0 %v2422_v60 }
  0x98   :  { %765 = vmatprep.subr.bf16.mxu1 %v2425_v61 }
  0x9a   :  { %726 = vmatpush1.bf16.msra.mxu0 %v2428_v62 }
  0x9b   :  { %766 = vmatpush1.bf16.msra.mxu1 %v2432_v63  ;;  %727 = vmatprep.subr.bf16.mxu0 %v2434_v1 }
  0x9c   :  { %767 = vmatprep.subr.bf16.mxu1 %v2437_v2 }
  0x9e   :  { %728 = vmatpush1.bf16.msra.mxu0 %v2440_v3 }
  0x9f   :  { %768 = vmatpush1.bf16.msra.mxu1 %v2444_v4  ;;  %729 = vmatprep.subr.bf16.mxu0 %v2446_v5 }
  0xa0   :  { %769 = vmatprep.subr.bf16.mxu1 %v2451_v7 }
  0xa2   :  { %730 = vmatpush1.bf16.msra.mxu0 %v2449_v6 }
  0xa3   :  { %770 = vmatpush1.bf16.msra.mxu1 %v2453_v8  ;;  %731 = vmatprep.subr.bf16.mxu0 %v2456_v9 }
  0xa4   :  { %771 = vmatprep.subr.bf16.mxu1 %v2458_v10 }
  0xa6   :  { %732 = vmatpush1.bf16.msra.mxu0 %v2463_v11 }
  0xa7   :  { %772 = vmatpush1.bf16.msra.mxu1 %v2465_v12  ;;  %733 = vmatprep.subr.bf16.mxu0 %v2467_v13 }
  0xa8   :  { %773 = vmatprep.subr.bf16.mxu1 %v2470_v14 }
  0xaa   :  { %734 = vmatpush1.bf16.msra.mxu0 %v2475_v15 }
  0xab   :  { %774 = vmatpush1.bf16.msra.mxu1 %v2477_v16  ;;  %735 = vmatprep.subr.bf16.mxu0 %v2479_v17 }
  0xac   :  { %775 = vmatprep.subr.bf16.mxu1 %v2482_v18 }
  0xae   :  { %736 = vmatpush1.bf16.msra.mxu0 %v2488_v19 }
  0xaf   :  { %776 = vmatpush1.bf16.msra.mxu1 %v2492_v20  ;;  %737 = vmatprep.subr.bf16.mxu0 %v1984_v21 }
  0xb0   :  { %777 = vmatprep.subr.bf16.mxu1 %v2495_v22 }
  0xb2   :  { %738 = vmatpush1.bf16.msra.mxu0 %v1982_v23 }
  0xb3   :  { %778 = vmatpush1.bf16.msra.mxu1 %v2499_v24  ;;  %739 = vmatprep.subr.bf16.mxu0 %v1990_v25 }
  0xb4   :  { %779 = vmatprep.subr.bf16.mxu1 %v2502_v26  ;;  %v2675_v26 = vmov 0.0|0.0  }
  0xb6   :  { %740 = vmatpush1.bf16.msra.mxu0 %v1988_v27 }
  0xb7   :  { %780 = vmatpush1.bf16.msra.mxu1 %v2505_v28  ;;  %741 = vmatprep.subr.bf16.mxu0 %v1996_v29  ;;  %v2674_v28 = vmov 0.0  }
  0xb8   :  { %781 = vmatprep.subr.bf16.mxu1 %v2508_v30 }
  0xba   :  { %742 = vmatpush1.bf16.msra.mxu0 %v1994_v31 }
  0xbb   :  { %782 = vmatpush1.bf16.msra.mxu1 %v2511_v32  ;;  %743 = vmatprep.subr.bf16.mxu0 %v2002_v33 }
  0xbc   :  { %783 = vmatprep.subr.bf16.mxu1 %v2514_v36 }
  0xbe   :  { %744 = vmatpush1.bf16.msra.mxu0 %v2000_v45 }
  0xbf   :  { %784 = vmatpush1.bf16.msra.mxu1 %v2517_v0  ;;  %1787 = vmatprep.subr.bf16.mxu0 %v2674_v28 }
  0xc0   :  { %1338 = vmatprep.subr.bf16.mxu1 %v2351_v34  ;;  %v2006_v34 = vld [vmem:[#allocation11] sm:$0xff]  }
  0xc1   :  { %746 = vmatmul.mubr.bf16.vlgmr.msra.gmra.mrb[4].mxu0 %v2675_v26 }
  0xc2   :  { %786 = vmatmul.mubr.bf16.vlgmr.msra.gmra.mrb[4].mxu1 %v2675_v26  ;;  %1788 = vmatpush3.bf16.msra.mxu0 %v2006_v34 }
  0xc3   :  { %1339 = vmatpush1.bf16.msra.mxu1 %v2355_v37  ;;  %1789 = vmatprep.subr.bf16.mxu0 %v2674_v28  ;;  %v2007_v37 = vld [vmem:[#allocation11 + $0x8] sm:$0xff]  }
  0xc4   :  { %1340 = vmatprep.subr.bf16.mxu1 %v2360_v39  ;;  %v2008_v39 = vld [vmem:[#allocation11 + $0x10] sm:$0xff]   ;;  %1803 = vmatprep.mubr.msk.bf16.mxu0 %vm2227_vm0, %v2674_v28 }
  0xc6   :  { %1790 = vmatpush3.bf16.msra.mxu0 %v2007_v37 }
  0xc7   :  { %1341 = vmatpush1.bf16.msra.mxu1 %v2366_v41  ;;  %1791 = vmatprep.subr.bf16.mxu0 %v2674_v28  ;;  %v2009_v41 = vld [vmem:[#allocation11 + $0x18] sm:$0xff]  }
  0xc8   :  { %1342 = vmatprep.subr.bf16.mxu1 %v2372_v43  ;;  %v2010_v43 = vld [vmem:[#allocation11 + $0x20] sm:$0xff]  }
  0xca   :  { %1792 = vmatpush3.bf16.msra.mxu0 %v2008_v39 }
  0xcb   :  { %1343 = vmatpush1.bf16.msra.mxu1 %v2380_v46  ;;  %1793 = vmatprep.subr.bf16.mxu0 %v2674_v28  ;;  %v2012_v46 = vld [vmem:[#allocation11 + $0x30] sm:$0xff]  }
  0xcc   :  { %1344 = vmatprep.subr.bf16.mxu1 %v2386_v48  ;;  %v2013_v48 = vld [vmem:[#allocation11 + $0x38] sm:$0xff]  }
  0xce   :  { %1794 = vmatpush3.bf16.msra.mxu0 %v2009_v41 }
  0xcf   :  { %1345 = vmatpush1.bf16.msra.mxu1 %v2392_v50  ;;  %1795 = vmatprep.subr.bf16.mxu0 %v2674_v28 }
  0xd0   :  { %1346 = vmatprep.subr.bf16.mxu1 %v2398_v52 }
  0xd2   :  { %1796 = vmatpush3.bf16.msra.mxu0 %v2010_v43 }
  0xd3   :  { %1347 = vmatpush1.bf16.msra.mxu1 %v2404_v54  ;;  %1797 = vmatprep.subr.bf16.mxu0 %v2674_v28 }
  0xd4   :  { %1348 = vmatprep.subr.bf16.mxu1 %v2410_v56 }
  0xd7   :  { %1349 = vmatpush1.bf16.msra.mxu1 %v2416_v58  ;;  %v166_v58 = vlaneseq }
  0xd8   :  { %1350 = vmatprep.subr.bf16.mxu1 %v2422_v60 }
  0xd9   :  { %v167_v60 = vshrl.u32 %v166_v58, 7 }
  0xdb   :  { %1351 = vmatpush1.bf16.msra.mxu1 %v2428_v62  ;;  %v168_v62 = vsub.s32 0, %v167_v60 }
  0xdc   :  { %1352 = vmatprep.subr.bf16.mxu1 %v2434_v1  ;;  %v164_v1 = vld [vmem:[%s2661_s4] sm:$0xf] }
  0xdf   :  { %1353 = vmatpush1.bf16.msra.mxu1 %v2440_v3  ;;  %v176_v3 = vsub.s32 3, %v167_v60 }
  0xe0   :  { %1354 = vmatprep.subr.bf16.mxu1 %v2446_v5  ;;  %v169_v5 = vrot.slane %v164_v1, %v168_v62 }
  0xe3   :  { %1355 = vmatpush1.bf16.msra.mxu1 %v2449_v6  ;;  %v177_v6 = vrot.slane %v164_v1, %v176_v3 }
  0xe4   :  { %1356 = vmatprep.subr.bf16.mxu1 %v2456_v9 }
  0xe7   :  { %1357 = vmatpush1.bf16.msra.mxu1 %v2463_v11 }
  0xe8   :  { %1358 = vmatprep.subr.bf16.mxu1 %v2467_v13 }
  0xeb   :  { %1359 = vmatpush1.bf16.msra.mxu1 %v2475_v15 }
  0xec   :  { %1360 = vmatprep.subr.bf16.mxu1 %v2479_v17 }
  0xef   :  { %1361 = vmatpush1.bf16.msra.mxu1 %v2488_v19 }
  0xf0   :  { %1362 = vmatprep.subr.bf16.mxu1 %v1984_v21 }
  0xf3   :  { %1363 = vmatpush1.bf16.msra.mxu1 %v1982_v23  ;;  %v172_v23 = vsub.s32 2, %v167_v60 }
  0xf4   :  { %1364 = vmatprep.subr.bf16.mxu1 %v1990_v25 }
  0xf7   :  { %1365 = vmatpush1.bf16.msra.mxu1 %v1988_v27 }
  0xf8   :  { %1366 = vmatprep.subr.bf16.mxu1 %v1996_v29 }
  0xfb   :  { %1367 = vmatpush1.bf16.msra.mxu1 %v1994_v31 }
  0xfc   :  { %1368 = vmatprep.subr.bf16.mxu1 %v2002_v33  ;;  %v173_v33 = vrot.slane %v164_v1, %v172_v23 }
  0xff   :  { %1369 = vmatpush1.bf16.msra.mxu1 %v2000_v45  ;;  %v2011_v45 = vld [vmem:[#allocation11 + $0x28] sm:$0xff]  }
 0x100   :  { %1807 = vmatprep.subr.bf16.mxu1 %v2674_v28  ;;  %1798 = vmatpush3.bf16.msra.mxu0 %v2011_v45 }
 0x101   :  { %1799 = vmatprep.subr.bf16.mxu0 %v2674_v28 }
 0x104   :  { %1800 = vmatpush3.bf16.msra.mxu0 %v2012_v46 }
 0x105   :  { %1801 = vmatprep.subr.bf16.mxu0 %v2674_v28 }
 0x108   :  { %1802 = vmatpush3.bf16.msra.mxu0 %v2013_v48 }
 0x109   :  { %1378 = vmatprep.subr.bf16.mxu0 %v2353_v35 }
 0x154   :  { %v247_v50 = vpop.f32.mrb[0].mxu0 }
 0x155   :  { %v249_v52 = vpop.f32.mrb[1].mxu0  ;;  %v317_v54 = vpop.f32.mrb[0].mxu1  ;;  %v2563_v9 = vadd.f32 %v247_v50, %v169_v5 }
 0x156   :  { %v319_v56 = vpop.f32.mrb[1].mxu1  ;;  %v2566_v37 = vadd.f32 %v317_v54, %v173_v33 }
 0x157   :  { %v320_v13 = vadd.f32 %v319_v56, %v177_v6 }
 0x194   :  { %v747_v11 = vpop.f32.mrb[4].mxu0 }
 0x195   :  { %v794_v35 = vadd.f32 %v747_v11, %v2563_v9  ;;  %v787_v15 = vpop.f32.mrb[4].mxu1  ;;  %v749_v17 = vpop.f32.mrb[5].mxu0 }
 0x196   :  { %v789_v19 = vpop.f32.mrb[5].mxu1  ;;  %v750_v21 = vpop.f32.mrb[6].mxu0  ;;  %v795_v39 = vadd.f32 %v787_v15, %v2566_v37 }
 0x197   :  { %v1677_v25 = vmul.f32 -1.442695, %v794_v35  ;;  %v796_v26 = vadd.f32 %v789_v19, %v320_v13  ;;  %v751_v27 = vpop.f32.mrb[7].mxu0  ;;  %v791_v29 = vpop.f32.mrb[6].mxu1 }
 0x198   :  { %v792_v31 = vpop.f32.mrb[7].mxu1 }
 0x199   :  { %2022 = vpow2.f32 %v1677_v25  ;;  %v1678_v34 = vmul.f32 -1.442695, %v796_v26 }
 0x19b   :  { %2024 = vpow2.f32 %v1678_v34 }
 0x19c   :  { %2026 = vtanh.f32 %v795_v39 }
 0x1a3   :  { %v2023_v41 = vpop.eup %2022 }
 0x1a4   :  { %v800_v43 = vadd.f32 1.0, %v2023_v41 }
 0x1a5   :  { %v2025_v45 = vpop.eup %2024 }
 0x1a6   :  { %2028 = vrcp.f32 %v800_v43  ;;  %v807_v46 = vadd.f32 1.0, %v2025_v45  ;;  %v2027_v48 = vpop.eup %2026  ;;  %v1560_v45 = vld [vmem:[#allocation6 + $0x8] sm:$0xff] }
 0x1a8   :  { %2030 = vrcp.f32 %v807_v46 }
 0x1b0   :  { %v2029_v50 = vpop.eup %2028 }
 0x1b1   :  { %v810_v52 = vmul.f32 %v2029_v50, %v2027_v48 }
 0x1b2   :  { %v2031_v54 = vpop.eup %2030 }
 0x1b3   :  { %2032 = vtanh.f32 %v810_v52  ;;  %v813_v56 = vpack.c.bf16 %v810_v52, %v810_v52 }
 0x1b5   :  { %1804 = vmatmul.mubr.bf16.vlgmr.msra.gmra.mrb[8].mxu0 %v813_v56 }
 0x1b6   :  { %1379 = vmatpush1.bf16.msra.mxu0 %v2358_v38  ;;  %v2676_v38 = vld [vmem:[#allocation20_spill] sm:$0xff] }
 0x1b7   :  { %1380 = vmatprep.subr.bf16.mxu0 %v2363_v40  ;;  %v2677_v40 = vld [vmem:[#allocation21_spill] sm:$0xff] }
 0x1ba   :  { %1381 = vmatpush1.bf16.msra.mxu0 %v2370_v42  ;;  %v2603_v42 = vld [vmem:[%s2663_s6] ss:$0 sm:$0xff]  ;;  %s2229_s6 = smov [#allocation12]  }
 0x1bb   :  { %1382 = vmatprep.subr.bf16.mxu0 %v2375_v44  ;;  %s1583_s1 = sshll.u32 %s2229_s6, 4  ;;  %s1584_s1 = int_to_ptr.vmem [resolvable:$true] %s1583_s1 }
 0x1bc   :  { %s2158_s28 = scalar_lea.vmem %s1584_s1, 256  ;;  %p2163_p13 = scmp.lt.s32.totalorder %s1584_s1, %s1584_s1 }
 0x1bd   :  { %v2033_v60 = vpop.eup %2032  ;;  %p2159_p12 = scmp.ne.s32.totalorder %s1584_s1, %s2158_s28  ;;  %p2164_p0 = scmp.lt.s32.totalorder %s2158_s28, %s2158_s28 }
 0x1be   :  { %v812_v62 = vmul.f32 %v2033_v60, %v2031_v54  ;;  %1383 = vmatpush1.bf16.msra.mxu0 %v2384_v47 }
 0x1bf   :  { %1384 = vmatprep.subr.bf16.mxu0 %v2389_v49  ;;  %p2165_p1 = por %p2164_p0, %p2163_p13 }
 0x1c0   :  { %v953_v1 = vpack.c.bf16 %v812_v62, %v812_v62 }
 0x1c1   :  { %p2166_p2 = pnand %p2165_p1, %p2159_p12 }
 0x1c2   :  { %1370 = vmatprep.mubr.bf16.mxu1 %v953_v1  ;;  %1410 = vmatprep.mubr.bf16.mxu0 %v953_v1 }
 0x1c3   :  { %1385 = vmatpush1.bf16.msra.mxu0 %v2396_v51 }
 0x1c4   :  { %1386 = vmatprep.subr.bf16.mxu0 %v2401_v53 }
 0x1c7   :  { %1387 = vmatpush1.bf16.msra.mxu0 %v2408_v55 }
 0x1c8   :  { %1388 = vmatprep.subr.bf16.mxu0 %v2413_v57  ;;  %v934_v57 = vld [vmem:[#allocation6] sm:$0xff] }
 0x1cb   :  { %1389 = vmatpush1.bf16.msra.mxu0 %v2420_v59 }
 0x1cc   :  { %1390 = vmatprep.subr.bf16.mxu0 %v2425_v61 }
 0x1cf   :  { %1391 = vmatpush1.bf16.msra.mxu0 %v2432_v63  ;;  %v323_v63 = vand.u32 127, %v166_v58 }
 0x1d0   :  { %1392 = vmatprep.subr.bf16.mxu0 %v2437_v2 }
 0x1d3   :  { %1393 = vmatpush1.bf16.msra.mxu0 %v2444_v4 }
 0x1d4   :  { %1394 = vmatprep.subr.bf16.mxu0 %v2451_v7 }
 0x1d7   :  { %1395 = vmatpush1.bf16.msra.mxu0 %v2453_v8 }
 0x1d8   :  { %1396 = vmatprep.subr.bf16.mxu0 %v2458_v10 }
 0x1db   :  { %1397 = vmatpush1.bf16.msra.mxu0 %v2465_v12  ;;  %v2228_v12 = vmov 1.0|1.0  }
 0x1dc   :  { %1398 = vmatprep.subr.bf16.mxu0 %v2470_v14  ;;  %v2014_v14 = vld [vmem:[#allocation11] sm:$0xff]  }
 0x1df   :  { %1399 = vmatpush1.bf16.msra.mxu0 %v2477_v16  ;;  %v2015_v16 = vld [vmem:[#allocation11 + $0x8] sm:$0xff]  }
 0x1e0   :  { %1400 = vmatprep.subr.bf16.mxu0 %v2482_v18  ;;  %v2016_v18 = vld [vmem:[#allocation11 + $0x10] sm:$0xff]  }
 0x1e3   :  { %1401 = vmatpush1.bf16.msra.mxu0 %v2492_v20  ;;  %v2017_v20 = vld [vmem:[#allocation11 + $0x18] sm:$0xff]  }
 0x1e4   :  { %1402 = vmatprep.subr.bf16.mxu0 %v2495_v22  ;;  %v2018_v22 = vld [vmem:[#allocation11 + $0x20] sm:$0xff]  }
 0x1e7   :  { %1403 = vmatpush1.bf16.msra.mxu0 %v2499_v24  ;;  %v2019_v24 = vld [vmem:[#allocation11 + $0x28] sm:$0xff]  }
 0x1e8   :  { %1404 = vmatprep.subr.bf16.mxu0 %v2676_v38 }
 0x1eb   :  { %1405 = vmatpush1.bf16.msra.mxu0 %v2677_v40 }
 0x1ec   :  { %1406 = vmatprep.subr.bf16.mxu0 %v2508_v30  ;;  %v2020_v30 = vld [vmem:[#allocation11 + $0x30] sm:$0xff]  }
 0x1ef   :  { %1407 = vmatpush1.bf16.msra.mxu0 %v2511_v32  ;;  %v2021_v32 = vld [vmem:[#allocation11 + $0x38] sm:$0xff]  }
 0x1f0   :  { %1408 = vmatprep.subr.bf16.mxu0 %v2514_v36 }
 0x1f3   :  { %1409 = vmatpush1.bf16.msra.mxu0 %v2517_v0  ;;  %v2607_v0 = vcvt.s32.f32 %v323_v63 }
 0x288   :  { %v919_v44 = vpop.f32.mrb[8].mxu0 }
 0x289   :  { %v920_v47 = vadd.f32 %v2603_v42, %v919_v44  ;;  %v1805_v49 = vpop.f32.mrb[9].mxu0 }
 0x28a   :  { %v922_v51 = vpop.f32.mrb[10].mxu0 }
 0x28b   :  { %925 = vmax.xlane.f32.xlu0 %v920_v47  ;;  %v1806_v53 = vpop.f32.mrb[11].mxu0 }
 0x318   :  { %v926_v55 = vpop.xlane.xlu0 %925 }
 0x319   :  { %v927_v59 = vsub.f32 %v920_v47, %v926_v55 }
 0x31b   :  { %v935_v61 = vadd.f32 %v934_v57, %v927_v59 }
 0x31d   :  { %936 = vmax.xlane.f32.xlu0 %v935_v61 }
 0x3aa   :  { %v937_v2 = vpop.xlane.xlu0 %936 }
 0x3ab   :  { %vm938_vm1 = vcmp.ge.f32.partialorder %v935_v61, %v937_v2 }
 0x3ac   :  { %v939_v4 = vsel %vm938_vm1, %v2607_v0, 128.0 }
 0x3ad   :  { %940 = vmin.xlane.f32.xlu1 %v939_v4 }
 0x43a   :  { %v941_v7 = vpop.xlane.xlu1 %940 }
 0x43b   :  { %vm942_vm2 = vcmp.eq.f32.partialorder %v2607_v0, %v941_v7 }
 0x43c   :  { %v1688_v8 = vsel %vm942_vm2, 1.0, %v2674_v28  ;;  %vm1765_vm3 = vmpackc.low %vm942_vm2, %vm942_vm2 }
 0x43d   :  { %v946_v10 = vpack.c.bf16 %v1688_v8, %v1688_v8  ;;  %1766 = vmatmul.mubr.msk.bf16.vlgmr.msra.gmra.mrb[8].mxu1 %vm1765_vm3, %v2228_v12  ;;  %1768 = vmatmul.mubr.msk.bf16.vlgmr.msra.gmra.mrb[12].mxu0 %vm1765_vm3, %v2228_v12 }
 0x43e   :  { %1823 = vmatprep.mubr.msk.bf16.mxu1 %vm2227_vm0, %v2674_v28  ;;  %1808 = vmatpush3.bf16.msra.mxu1 %v2014_v14 }
 0x43f   :  { %947 = vst [vmem:[#allocation13] sm:$0xf] %v946_v10  ;;  %1809 = vmatprep.subr.bf16.mxu1 %v2674_v28 }
 0x442   :  { %1810 = vmatpush3.bf16.msra.mxu1 %v2015_v16 }
 0x443   :  { %1811 = vmatprep.subr.bf16.mxu1 %v2674_v28 }
 0x446   :  { %1812 = vmatpush3.bf16.msra.mxu1 %v2016_v18 }
 0x447   :  { %1813 = vmatprep.subr.bf16.mxu1 %v2674_v28 }
 0x44a   :  { %1814 = vmatpush3.bf16.msra.mxu1 %v2017_v20 }
 0x44b   :  { %1815 = vmatprep.subr.bf16.mxu1 %v2674_v28 }
 0x44e   :  { %1816 = vmatpush3.bf16.msra.mxu1 %v2018_v22 }
 0x44f   :  { %1817 = vmatprep.subr.bf16.mxu1 %v2674_v28 }
 0x452   :  { %1818 = vmatpush3.bf16.msra.mxu1 %v2019_v24 }
 0x453   :  { %1819 = vmatprep.subr.bf16.mxu1 %v2674_v28 }
 0x456   :  { %1820 = vmatpush3.bf16.msra.mxu1 %v2020_v30 }
 0x457   :  { %1821 = vmatprep.subr.bf16.mxu1 %v2674_v28 }
 0x45a   :  { %1822 = vmatpush3.bf16.msra.mxu1 %v2021_v32 }
 0x510   :  { %v1372_v36 = vpop.f32.mrb[8].mxu1  ;;  %v1412_v58 = vpop.f32.mrb[12].mxu0 }
 0x511   :  { %v1419_v3 = vadd.f32 %v1372_v36, %v2563_v9  ;;  %v1374_v5 = vpop.f32.mrb[9].mxu1  ;;  %v1414_v6 = vpop.f32.mrb[13].mxu0  ;;  %v1420_v19 = vadd.f32 %v1412_v58, %v2566_v37  ;;  %v928_v9 = vmul.f32 1.442695, %v927_v59 }
 0x512   :  { %v1375_v11 = vpop.f32.mrb[10].mxu1  ;;  %v1416_v13 = vpop.f32.mrb[14].mxu0 }
 0x513   :  { %v1753_v35 = vmul.f32 -1.442695, %v1419_v3  ;;  %v1376_v15 = vpop.f32.mrb[11].mxu1  ;;  %v1417_v17 = vpop.f32.mrb[15].mxu0 }
 0x515   :  { %2034 = vpow2.f32 %v1753_v35 }
 0x516   :  { %2036 = vtanh.f32 %v1420_v19 }
 0x51f   :  { %v2035_v21 = vpop.eup %2034 }
 0x520   :  { %v1425_v23 = vadd.f32 1.0, %v2035_v21  ;;  %v2037_v25 = vpop.eup %2036 }
 0x522   :  { %2038 = vrcp.f32 %v1425_v23 }
 0x523   :  { %2040 = vpow2.f32 %v928_v9 }
 0x52c   :  { %v2039_v26 = vpop.eup %2038 }
 0x52d   :  { %v1435_v27 = vmul.f32 %v2039_v26, %v2037_v25  ;;  %v2041_v43 = vpop.eup %2040 }
 0x52f   :  { %v1438_v29 = vpack.c.bf16 %v1435_v27, %v1435_v27 }
 0x531   :  { %1824 = vmatmul.mubr.bf16.vlgmr.msra.gmra.mrb[12].mxu1 %v1438_v29 }
 0x604   :  { %v1544_v31 = vpop.f32.mrb[12].mxu1 }
 0x605   :  { %v1545_v33 = vadd.f32 %v2603_v42, %v1544_v31  ;;  %v1825_v34 = vpop.f32.mrb[13].mxu1 }
 0x606   :  { %v1547_v39 = vpop.f32.mrb[14].mxu1 }
 0x607   :  { %1550 = vmax.xlane.f32.xlu1 %v1545_v33  ;;  %v1826_v41 = vpop.f32.mrb[15].mxu1 }
 0x60b   :  { %930 = vadd.xlane.f32.xlu1 %v2041_v43 }
 0x694   :  { %v1551_v37 = vpop.xlane.xlu1 %1550 }
 0x695   :  { %v1552_v46 = vsub.f32 %v1545_v33, %v1551_v37 }
 0x697   :  { %v1553_v48 = vmul.f32 1.442695, %v1552_v46  ;;  %v1561_v50 = vadd.f32 %v1560_v45, %v1552_v46 }
 0x698   :  { %v931_v52 = vpop.xlane.xlu1 %930 }
 0x699   :  { %2042 = vpow2.f32 %v1553_v48  ;;  %1562 = vmax.xlane.f32.xlu0 %v1561_v50 }
 0x69a   :  { %2044 = vrcp.f32 %v931_v52 }
 0x6a3   :  { %v2043_v56 = vpop.eup %2042 }
 0x6a4   :  { %v2045_v54 = vpop.eup %2044  ;;  %1555 = vadd.xlane.f32.xlu0 %v2043_v56 }
 0x6a5   :  { %v933_v60 = vmul.f32 %v2045_v54, %v2041_v43 }
 0x6a7   :  { %945 = vst [vmem:[#allocation12] sm:$0xff] %v933_v60 }
 0x726   :  { %v1563_v62 = vpop.xlane.xlu0 %1562 }
 0x727   :  { %vm1564_vm4 = vcmp.ge.f32.partialorder %v1561_v50, %v1563_v62 }
 0x728   :  { %v1565_v1 = vsel %vm1564_vm4, %v2607_v0, 128.0 }
 0x729   :  { %1566 = vmin.xlane.f32.xlu1 %v1565_v1 }
 0x731   :  { %v1556_v38 = vpop.xlane.xlu0 %1555 }
 0x732   :  { %2046 = vrcp.f32 %v1556_v38 }
 0x73c   :  { %v2047_v40 = vpop.eup %2046 }
 0x73d   :  { %v1558_v42 = vmul.f32 %v2047_v40, %v2043_v56 }
 0x73f   :  { %1572 = vst [vmem:[#allocation12 + $0x8] sm:$0xff] %v1558_v42 }
 0x740   :  { %2169 = shalt.err (!%p2166_p2)
}
 0x741   :  { %s2170_s0 = scalar_lea.hbm %s2664_s7, 256 }
 0x742   :  { %p2171_p3 = scmp.ne.s32.totalorder %s2664_s7, %s2170_s0  ;;  %p2174_p4 = scmp.lt.u32.totalorder %s2170_s0, %s2664_s7 }
 0x744   :  { %p2176_p5 = pnand %p2174_p4, %p2171_p3 }
 0x746   :  { %2179 = shalt.err (!%p2176_p5)
}
 0x747   :  { %1589 = dma.vmem_to_hbm [thread:$0]  %s1584_s1, 256, %s2664_s7, [#allocation5], %s2213_s15, %s2213_s15, %s2214_s16  }
 0x748   :  { %s2230_s19 = smov [#allocation13]  }
 0x749   :  { %s1595_s21 = sshll.u32 %s2230_s19, 4  ;;  %s1596_s21 = int_to_ptr.vmem [resolvable:$true] %s1595_s21 }
 0x74a   :  { %s2180_s22 = scalar_lea.vmem %s1596_s21, 128  ;;  %p2185_p7 = scmp.lt.s32.totalorder %s1596_s21, %s1596_s21 }
 0x74b   :  { %p2181_p6 = scmp.ne.s32.totalorder %s1596_s21, %s2180_s22  ;;  %p2186_p8 = scmp.lt.s32.totalorder %s2180_s22, %s2180_s22 }
 0x74d   :  { %p2187_p9 = por %p2186_p8, %p2185_p7 }
 0x74f   :  { %p2188_p10 = pnand %p2187_p9, %p2181_p6 }
 0x7b6   :  { %v1567_v44 = vpop.xlane.xlu1 %1566 }
 0x7b7   :  { %vm1568_vm5 = vcmp.eq.f32.partialorder %v2607_v0, %v1567_v44 }
 0x7b8   :  { %v1764_v47 = vsel %vm1568_vm5, 1.0, %v2674_v28 }
 0x7b9   :  { %v1573_v49 = vpack.c.bf16 %v1764_v47, %v1764_v47 }
 0x7bb   :  { %1575 = vst [vmem:[#allocation13 + $0x4] sm:$0xf] %v1573_v49 }
 0x7bc   :  { %2191 = shalt.err (!%p2188_p10)
}
 0x7bd   :  { %s2192_s7 = scalar_lea.hbm %s2665_s8, 128 }
 0x7be   :  { %p2193_p11 = scmp.ne.s32.totalorder %s2665_s8, %s2192_s7  ;;  %p2196_p12 = scmp.lt.u32.totalorder %s2192_s7, %s2665_s8 }
 0x7c0   :  { %p2198_p13 = pnand %p2196_p12, %p2193_p11 }
 0x7c2   :  { %2201 = shalt.err (!%p2198_p13)
}
 0x7c3   :  { %1601 = dma.vmem_to_hbm [thread:$0]  %s1596_s21, 128, %s2665_s8, [#allocation14], %s2223_s2, %s2223_s2, %s2224_s13  }
 0x7c4   :  { %2208 = dma.done.wait [#allocation5], 256  }
 0x7c5   :  { %2209 = vsyncadd [#allocation5], 4294967040 }
 0x7c6   :  { %2210 = dma.done.wait [#allocation14], 128  }
 0x7c7   :  { %2211 = vsyncadd [#allocation14], 4294967168 }
 0x7c8   :  { %1608 = vsyncpa [#allocation4], 1 }
 0x7c9   :  { %1609 = vsyncpa [#allocation7], 1 }
 0x7ca   :  { %1610 = vsyncpa [#allocation10], 1 }
 0x7cb   :  { %1611 = vsyncpa [#allocation5], 1 }
 0x7cc   :  { %1612 = vsyncpa [#allocation14], 1 }

</bundles_post_ra>
